<compile_context>
chip_gen: v7x
topology: tpu7x:2x2x1
jax: 0.10.0
libtpu: 0.0.40
codegen_flags: <defaults>
</compile_context>

<pallas_src>
import functools

import jax
import jax.numpy as jnp
from jax import lax
from jax.experimental import pallas as pl
from jax.experimental.pallas import tpu as pltpu


# ----------------------------- Pallas kernel ------------------------------

def _rmsnorm_f32(x, w):
    var = jnp.mean(x * x, axis=-1, keepdims=True)
    return (x * lax.rsqrt(var + 1e-6)) * w


def _minigpt_fused_kernel(patches_ref, pproj_ref, text_ref, wqkv_ref, wo_ref,
                          wgu_ref, wd_ref, lm_head_ref, n1_ref, n2_ref,
                          nf_ref, labels_ref, loss_ref, *, num_heads,
                          head_dim, ignore_index):
    # ---- encode_img fused: patches are zero-padded to [T, patch_dim] with
    # the real patches on the image rows, so the projection output already
    # sits on the correct sequence rows and a single add assembles embs. ----
    img = jnp.dot(patches_ref[...], pproj_ref[...],
                  preferred_element_type=jnp.float32)        # [T, D] f32
    h = text_ref[...] + img                                  # [T, D] residual
    T, D = h.shape

    # ---- RMSNorm -> fused QKV projection (bf16 MXU operands, f32 accum).
    # 1/sqrt(head_dim) is already folded into the Q columns of wqkv. ----
    a = _rmsnorm_f32(h, n1_ref[...])
    qkv = jnp.dot(a.astype(jnp.bfloat16), wqkv_ref[...],
                  preferred_element_type=jnp.float32)        # [T, 3D]
    q = qkv[:, 0:D]
    k = qkv[:, D:2 * D]
    v = qkv[:, 2 * D:3 * D]

    # ---- causal multi-head attention (heads are static 32-lane slices) ----
    row = lax.broadcasted_iota(jnp.int32, (T, T), 0)
    col = lax.broadcasted_iota(jnp.int32, (T, T), 1)
    causal = col <= row

    # contract dim 1 of q_h with dim 1 of k_h: no explicit XLU transpose.
    dn = (((1,), (1,)), ((), ()))
    # TODO(synk): rotary position embeddings of the real LLaMA layer omitted.
    heads = []
    for hh in range(num_heads):
        sl = slice(hh * head_dim, (hh + 1) * head_dim)
        qh = q[:, sl].astype(jnp.bfloat16)
        kh = k[:, sl].astype(jnp.bfloat16)
        vh = v[:, sl].astype(jnp.bfloat16)
        s = lax.dot_general(qh, kh, dimension_numbers=dn,
                            preferred_element_type=jnp.float32)    # [T, T]
        s = jnp.where(causal, s, -1e30)                      # mask stays f32
        m = jnp.max(s, axis=-1, keepdims=True)
        p = jnp.exp(s - m)                                   # softmax in f32
        p = p * pl.reciprocal(jnp.sum(p, axis=-1, keepdims=True), approx=True)
        oh = jnp.dot(p.astype(jnp.bfloat16), vh,
                     preferred_element_type=jnp.float32)     # [T, Dh]
        heads.append(oh.astype(jnp.bfloat16))
    # one K=128 output projection instead of 4 K=32 matmuls + 3 f32 adds
    o_all = jnp.concatenate(heads, axis=-1)                  # [T, D] bf16
    h = h + jnp.dot(o_all, wo_ref[...], preferred_element_type=jnp.float32)

    # ---- RMSNorm -> fused SwiGLU MLP (gate/up fused into one matmul) ----
    a2 = _rmsnorm_f32(h, n2_ref[...])
    gu = jnp.dot(a2.astype(jnp.bfloat16), wgu_ref[...],
                 preferred_element_type=jnp.float32)         # [T, 2F]
    f = gu.shape[-1] // 2
    g = gu[:, 0:f]
    u = gu[:, f:2 * f]
    mlp = (g * jax.nn.sigmoid(g)) * u                        # SwiGLU in f32
    h = h + jnp.dot(mlp.astype(jnp.bfloat16), wd_ref[...],
                    preferred_element_type=jnp.float32)

    # ---- final RMSNorm -> LM head ----
    hf = _rmsnorm_f32(h, nf_ref[...])
    logits = jnp.dot(hf.astype(jnp.bfloat16), lm_head_ref[...],
                     preferred_element_type=jnp.float32)     # [T, V]

    # ---- shifted cross-entropy with ignore_index, mean over valid rows.
    # labels[t] = tokens[t+1] for t < T-1, labels[T-1] = ignore_index, i.e.
    # exactly CrossEntropy(shift_logits, shift_labels) of the original. ----
    labels = labels_ref[...]                                 # [T, 1] int32
    m2 = jnp.max(logits, axis=-1, keepdims=True)
    z = logits - m2
    lse = jnp.log(jnp.sum(jnp.exp(z), axis=-1, keepdims=True))      # [T, 1]
    vcol = lax.broadcasted_iota(jnp.int32, logits.shape, 1)
    picked_z = jnp.sum(jnp.where(vcol == labels, z, 0.0),
                       axis=-1, keepdims=True)               # [T, 1]
    valid = (labels != ignore_index).astype(jnp.float32)
    loss_sum = jnp.sum((lse - picked_z) * valid)             # -logprob picked
    count = jnp.maximum(jnp.sum(valid), 1.0)
    loss_ref[0, 0] = loss_sum / count


def pallas_minigpt_forward(patches_full, text_embs, labels, params, *,
                           num_heads, head_dim, ignore_index=-200):
    """One fused kernel: vision proj + decoder layer + lm_head + mean CE."""
    kern = functools.partial(
        _minigpt_fused_kernel,
        num_heads=num_heads, head_dim=head_dim, ignore_index=ignore_index)
    out = pl.pallas_call(
        kern,
        out_shape=jax.ShapeDtypeStruct((1, 1), jnp.float32),
        out_specs=pl.BlockSpec(memory_space=pltpu.MemorySpace.SMEM),
    )(patches_full, params["patch_proj"], text_embs,
      params["wqkv"], params["wo"], params["wgu"], params["wd"],
      params["lm_head"], params["norm1"], params["norm2"], params["normf"],
      labels)
    return out[0, 0]


# ----------------------------- Model wrapper ------------------------------

class MiniGPTPallas:
    """Small deterministic stand-in for MiniGPT; hot path is one fused kernel."""

    def __init__(self, train_num, key):
        self.train_num = train_num
        self.D, self.V, self.H, self.Dh, self.F = 128, 256, 4, 32, 256
        self.patch = 8
        C = 3
        self.patch_dim = C * self.patch * self.patch             # 192
        s = 0.02
        bf = jnp.bfloat16
        ks = jax.random.split(key, 12 + train_num)

        # token sequences (stand-in for tokenizer output built in __init__);
        # sizes chosen so T = 4 + 4 + 24 = 32 (whole bf16 vregs, no padding).
        self.S0 = 4                      # "<s>[INST] <Img>" segment
        self.S1 = 24                     # "</Img> goal [/INST] target" segment
        self.num_img_tokens = 4          # stands in for the 256 visual tokens
        self.T = self.S0 + self.num_img_tokens + self.S1          # 32
        self.ignore_index = -200

        # vision projection (stands in for encode_img's ViT/Q-Former + proj)
        patch_proj = (jax.random.normal(ks[0], (self.patch_dim, self.D)) * s
                      ).astype(bf)
        # token embedding table (model.embed_tokens); gathered once in __init__.
        self.embed_tokens = jax.random.normal(ks[1], (self.V, self.D)) * s

        # single LLaMA-style decoder layer; Q/K/V fused to [D,3D] with the
        # 1/sqrt(head_dim) scale folded into Q, gate/up fused to [D,2F].
        scale = 1.0 / (self.Dh ** 0.5)
        wq = jax.random.normal(ks[2], (self.D, self.D)) * s * scale
        wk = jax.random.normal(ks[3], (self.D, self.D)) * s
        wv = jax.random.normal(ks[4], (self.D, self.D)) * s
        wo = jax.random.normal(ks[5], (self.D, self.D)) * s
        wg = jax.random.normal(ks[6], (self.D, self.F)) * s
        wu = jax.random.normal(ks[7], (self.D, self.F)) * s
        wd = jax.random.normal(ks[8], (self.F, self.D)) * s
        lm_head = jax.random.normal(ks[9], (self.D, self.V)) * s
        self.params = {
            "patch_proj": patch_proj,
            "wqkv": jnp.concatenate([wq, wk, wv], axis=1).astype(bf),  # [D,3D]
            "wo": wo.astype(bf),
            "wgu": jnp.concatenate([wg, wu], axis=1).astype(bf),       # [D,2F]
            "wd": wd.astype(bf),
            "lm_head": lm_head.astype(bf),
            "norm1": jnp.ones((1, self.D), jnp.float32),
            "norm2": jnp.ones((1, self.D), jnp.float32),
            "normf": jnp.ones((1, self.D), jnp.float32),
        }

        self.seg0 = jax.random.randint(ks[10], (1, self.S0), 0, self.V,
                                       dtype=jnp.int32)
        seg0_emb = jnp.take(self.embed_tokens, self.seg0[0], axis=0)   # [S0,D]
        img_zero = jnp.zeros((self.num_img_tokens, self.D), jnp.float32)
        img_placeholder = jnp.full((1, self.num_img_tokens),
                                   self.ignore_index, dtype=jnp.int32)

        # per-sample precompute: text embeddings (zeros at image rows),
        # inputs_tokens, target_len and shifted labels (ignore at last row).
        self.conv_seg1 = []
        self.inputs_tokens = []
        self.target_len = []
        self.text_embs = []
        self.labels_full = []
        for kk in range(train_num):
            seg1 = jax.random.randint(ks[12 + kk], (1, self.S1), 0, self.V,
                                      dtype=jnp.int32)
            self.conv_seg1.append(seg1)
            toks = jnp.concatenate([self.seg0, img_placeholder, seg1], axis=1)
            self.inputs_tokens.append(toks)                  # [1, T]
            self.target_len.append(toks.shape[1])
            seg1_emb = jnp.take(self.embed_tokens, seg1[0], axis=0)
            text = jnp.concatenate([seg0_emb, img_zero, seg1_emb], axis=0)
            self.text_embs.append(text.astype(jnp.float32))  # [T, D]
            labels = jnp.concatenate(
                [toks[0, 1:],
                 jnp.full((1,), self.ignore_index, jnp.int32)]).reshape(
                     self.T, 1)
            self.labels_full.append(labels)                  # [T, 1]

    # ---- model.encode_img patch extraction (projection happens in-kernel) ----
    def _extract_patches(self, images):
        B, C, Hh, Ww = images.shape                          # NCHW, like PyTorch
        P = self.patch
        x = images.reshape(B, C, Hh // P, P, Ww // P, P)
        x = x.transpose(0, 2, 4, 1, 3, 5).reshape(
            B, (Hh // P) * (Ww // P), C * P * P)             # [B, n_patches, C*P*P]
        return x[0].astype(jnp.bfloat16)                     # [n_patches, 192]

    # ---- forward: encode_img + context assembly + llama + shifted CE, fused ----
    def forward(self, inp):
        images, k = inp
        patches = self._extract_patches(images)              # [n_img, patch_dim]
        n_img = patches.shape[0]
        assert n_img == self.num_img_tokens

        # zero-padded [T, patch_dim] so the in-kernel projection lands the
        # image embeddings on rows S0 .. S0+num_img_tokens.
        patches_full = jnp.zeros((self.T, self.patch_dim), jnp.bfloat16)
        patches_full = patches_full.at[self.S0:self.S0 + n_img].set(patches)

        target_len_ = self.target_len[k]
        max_new_tokens = 300
        max_length = 2000
        current_max_len = self.T + max_new_tokens
        begin_idx = max(0, current_max_len - max_length)
        # At these sizes no left-truncation occurs and target_len == T, so the
        # fused kernel computes the shifted CE by pairing logits[t] with
        # tokens[t+1] and ignoring the final row.
        assert begin_idx == 0 and target_len_ == self.T

        loss = pallas_minigpt_forward(
            patches_full, self.text_embs[k], self.labels_full[k], self.params,
            num_heads=self.H, head_dim=self.Dh,
            ignore_index=self.ignore_index)
        return -loss


# --------------------------------- main ------------------------------------

if __name__ == "__main__":
    key = jax.random.PRNGKey(0)
    k_params, k_img = jax.random.split(key)
    model = MiniGPTPallas(train_num=2, key=k_params)
    images = jax.random.normal(k_img, (1, 3, 16, 16), jnp.float32)  # NCHW
    out = model.forward((images, 1))
    jax.block_until_ready(out)
    assert out.shape == () and jnp.isfinite(out)
    print("KERNEL_OK")
</pallas_src>

<mosaic_0001>
module attributes {stable_mosaic.version = 11 : i64} {
  func.func @_minigpt_fused_kernel(%arg0: memref<32x192xbf16, #tpu.memory_space<vmem>>, %arg1: memref<192x128xbf16, #tpu.memory_space<vmem>>, %arg2: memref<32x128xf32, #tpu.memory_space<vmem>>, %arg3: memref<128x384xbf16, #tpu.memory_space<vmem>>, %arg4: memref<128x128xbf16, #tpu.memory_space<vmem>>, %arg5: memref<128x512xbf16, #tpu.memory_space<vmem>>, %arg6: memref<256x128xbf16, #tpu.memory_space<vmem>>, %arg7: memref<128x256xbf16, #tpu.memory_space<vmem>>, %arg8: memref<1x128xf32, #tpu.memory_space<vmem>>, %arg9: memref<1x128xf32, #tpu.memory_space<vmem>>, %arg10: memref<1x128xf32, #tpu.memory_space<vmem>>, %arg11: memref<32x1xi32, #tpu.memory_space<vmem>>, %arg12: memref<1x1xf32, #tpu.memory_space<smem>>) attributes {dimension_semantics = [], scalar_prefetch = 0 : i64, scratch_operands = 0 : i64, tpu.core_type = #tpu.core_type<tc>} {
    %c0 = arith.constant 0 : index
    %c0_0 = arith.constant 0 : index
    %0 = vector.load %arg0[%c0, %c0_0] : memref<32x192xbf16, #tpu.memory_space<vmem>>, vector<32x192xbf16>
    %c0_1 = arith.constant 0 : index
    %c0_2 = arith.constant 0 : index
    %1 = vector.load %arg1[%c0_1, %c0_2] : memref<192x128xbf16, #tpu.memory_space<vmem>>, vector<192x128xbf16>
    %cst = arith.constant dense<0.000000e+00> : vector<32x128xf32>
    %2 = tpu.matmul %0, %1, %cst {dimension_numbers = #tpu.dot_dimension_numbers<[1], [0], [0], [1], [0, 0, 1, 1], [], []>} : vector<32x192xbf16>, vector<192x128xbf16>, vector<32x128xf32> -> vector<32x128xf32>
    %c0_3 = arith.constant 0 : index
    %c0_4 = arith.constant 0 : index
    %3 = vector.load %arg2[%c0_3, %c0_4] : memref<32x128xf32, #tpu.memory_space<vmem>>, vector<32x128xf32>
    %4 = arith.addf %3, %2 : vector<32x128xf32>
    %c0_5 = arith.constant 0 : index
    %c0_6 = arith.constant 0 : index
    %5 = vector.load %arg8[%c0_5, %c0_6] : memref<1x128xf32, #tpu.memory_space<vmem>>, vector<1x128xf32>
    %6 = arith.mulf %4, %4 : vector<32x128xf32>
    %cst_7 = arith.constant dense<0.000000e+00> : vector<32xf32>
    %7 = vector.multi_reduction <add>, %6, %cst_7 [1] : vector<32x128xf32> to vector<32xf32>
    %8 = vector.shape_cast %7 : vector<32xf32> to vector<32x1xf32>
    %cst_8 = arith.constant 1.280000e+02 : f32
    %9 = vector.broadcast %cst_8 : f32 to vector<32x1xf32>
    %10 = arith.divf %8, %9 : vector<32x1xf32>
    %cst_9 = arith.constant 9.99999997E-7 : f32
    %11 = vector.broadcast %cst_9 : f32 to vector<32x1xf32>
    %12 = arith.addf %10, %11 : vector<32x1xf32>
    %13 = math.rsqrt %12 : vector<32x1xf32>
    %14 = vector.broadcast %13 : vector<32x1xf32> to vector<32x128xf32>
    %15 = arith.mulf %4, %14 : vector<32x128xf32>
    %16 = vector.broadcast %5 : vector<1x128xf32> to vector<32x128xf32>
    %17 = arith.mulf %15, %16 : vector<32x128xf32>
    %18 = arith.truncf %17 : vector<32x128xf32> to vector<32x128xbf16>
    %c0_10 = arith.constant 0 : index
    %c0_11 = arith.constant 0 : index
    %19 = vector.load %arg3[%c0_10, %c0_11] : memref<128x384xbf16, #tpu.memory_space<vmem>>, vector<128x384xbf16>
    %cst_12 = arith.constant dense<0.000000e+00> : vector<32x384xf32>
    %20 = tpu.matmul %18, %19, %cst_12 {dimension_numbers = #tpu.dot_dimension_numbers<[1], [0], [0], [1], [0, 0, 1, 1], [], []>} : vector<32x128xbf16>, vector<128x384xbf16>, vector<32x384xf32> -> vector<32x384xf32>
    %21 = vector.extract_strided_slice %20 {offsets = [0, 0], sizes = [32, 128], strides = [1, 1]} : vector<32x384xf32> to vector<32x128xf32>
    %22 = vector.extract_strided_slice %20 {offsets = [0, 128], sizes = [32, 128], strides = [1, 1]} : vector<32x384xf32> to vector<32x128xf32>
    %23 = vector.extract_strided_slice %20 {offsets = [0, 256], sizes = [32, 128], strides = [1, 1]} : vector<32x384xf32> to vector<32x128xf32>
    %24 = tpu.iota {dimensions = array<i32: 0>} : vector<32x32xi32>
    %25 = tpu.iota {dimensions = array<i32: 1>} : vector<32x32xi32>
    %26 = arith.cmpi sle, %25, %24 : vector<32x32xi32>
    %27 = vector.extract_strided_slice %21 {offsets = [0, 0], sizes = [32, 32], strides = [1, 1]} : vector<32x128xf32> to vector<32x32xf32>
    %28 = arith.truncf %27 : vector<32x32xf32> to vector<32x32xbf16>
    %29 = vector.extract_strided_slice %22 {offsets = [0, 0], sizes = [32, 32], strides = [1, 1]} : vector<32x128xf32> to vector<32x32xf32>
    %30 = arith.truncf %29 : vector<32x32xf32> to vector<32x32xbf16>
    %31 = vector.extract_strided_slice %23 {offsets = [0, 0], sizes = [32, 32], strides = [1, 1]} : vector<32x128xf32> to vector<32x32xf32>
    %32 = arith.truncf %31 : vector<32x32xf32> to vector<32x32xbf16>
    %cst_13 = arith.constant dense<0.000000e+00> : vector<32x32xf32>
    %33 = tpu.matmul %28, %30, %cst_13 {dimension_numbers = #tpu.dot_dimension_numbers<[1], [1], [0], [0], [0, 0, 1, 0], [], []>} : vector<32x32xbf16>, vector<32x32xbf16>, vector<32x32xf32> -> vector<32x32xf32>
    %cst_14 = arith.constant -1.000000e+30 : f32
    %34 = vector.broadcast %cst_14 : f32 to vector<32x32xf32>
    %35 = arith.select %26, %33, %34 : vector<32x32xi1>, vector<32x32xf32>
    %cst_15 = arith.constant dense<0xFF800000> : vector<32xf32>
    %36 = vector.multi_reduction <maximumf>, %35, %cst_15 [1] : vector<32x32xf32> to vector<32xf32>
    %37 = vector.shape_cast %36 : vector<32xf32> to vector<32x1xf32>
    %38 = vector.broadcast %37 : vector<32x1xf32> to vector<32x32xf32>
    %39 = arith.subf %35, %38 : vector<32x32xf32>
    %40 = math.exp %39 : vector<32x32xf32>
    %cst_16 = arith.constant dense<0.000000e+00> : vector<32xf32>
    %41 = vector.multi_reduction <add>, %40, %cst_16 [1] : vector<32x32xf32> to vector<32xf32>
    %42 = vector.shape_cast %41 : vector<32xf32> to vector<32x1xf32>
    %43 = tpu.reciprocal %42 {approx = true} : vector<32x1xf32> -> vector<32x1xf32>
    %44 = vector.broadcast %43 : vector<32x1xf32> to vector<32x32xf32>
    %45 = arith.mulf %40, %44 : vector<32x32xf32>
    %46 = arith.truncf %45 : vector<32x32xf32> to vector<32x32xbf16>
    %cst_17 = arith.constant dense<0.000000e+00> : vector<32x32xf32>
    %47 = tpu.matmul %46, %32, %cst_17 {dimension_numbers = #tpu.dot_dimension_numbers<[1], [0], [0], [1], [0, 0, 1, 1], [], []>} : vector<32x32xbf16>, vector<32x32xbf16>, vector<32x32xf32> -> vector<32x32xf32>
    %48 = arith.truncf %47 : vector<32x32xf32> to vector<32x32xbf16>
    %49 = vector.extract_strided_slice %21 {offsets = [0, 32], sizes = [32, 32], strides = [1, 1]} : vector<32x128xf32> to vector<32x32xf32>
    %50 = arith.truncf %49 : vector<32x32xf32> to vector<32x32xbf16>
    %51 = vector.extract_strided_slice %22 {offsets = [0, 32], sizes = [32, 32], strides = [1, 1]} : vector<32x128xf32> to vector<32x32xf32>
    %52 = arith.truncf %51 : vector<32x32xf32> to vector<32x32xbf16>
    %53 = vector.extract_strided_slice %23 {offsets = [0, 32], sizes = [32, 32], strides = [1, 1]} : vector<32x128xf32> to vector<32x32xf32>
    %54 = arith.truncf %53 : vector<32x32xf32> to vector<32x32xbf16>
    %cst_18 = arith.constant dense<0.000000e+00> : vector<32x32xf32>
    %55 = tpu.matmul %50, %52, %cst_18 {dimension_numbers = #tpu.dot_dimension_numbers<[1], [1], [0], [0], [0, 0, 1, 0], [], []>} : vector<32x32xbf16>, vector<32x32xbf16>, vector<32x32xf32> -> vector<32x32xf32>
    %cst_19 = arith.constant -1.000000e+30 : f32
    %56 = vector.broadcast %cst_19 : f32 to vector<32x32xf32>
    %57 = arith.select %26, %55, %56 : vector<32x32xi1>, vector<32x32xf32>
    %cst_20 = arith.constant dense<0xFF800000> : vector<32xf32>
    %58 = vector.multi_reduction <maximumf>, %57, %cst_20 [1] : vector<32x32xf32> to vector<32xf32>
    %59 = vector.shape_cast %58 : vector<32xf32> to vector<32x1xf32>
    %60 = vector.broadcast %59 : vector<32x1xf32> to vector<32x32xf32>
    %61 = arith.subf %57, %60 : vector<32x32xf32>
    %62 = math.exp %61 : vector<32x32xf32>
    %cst_21 = arith.constant dense<0.000000e+00> : vector<32xf32>
    %63 = vector.multi_reduction <add>, %62, %cst_21 [1] : vector<32x32xf32> to vector<32xf32>
    %64 = vector.shape_cast %63 : vector<32xf32> to vector<32x1xf32>
    %65 = tpu.reciprocal %64 {approx = true} : vector<32x1xf32> -> vector<32x1xf32>
    %66 = vector.broadcast %65 : vector<32x1xf32> to vector<32x32xf32>
    %67 = arith.mulf %62, %66 : vector<32x32xf32>
    %68 = arith.truncf %67 : vector<32x32xf32> to vector<32x32xbf16>
    %cst_22 = arith.constant dense<0.000000e+00> : vector<32x32xf32>
    %69 = tpu.matmul %68, %54, %cst_22 {dimension_numbers = #tpu.dot_dimension_numbers<[1], [0], [0], [1], [0, 0, 1, 1], [], []>} : vector<32x32xbf16>, vector<32x32xbf16>, vector<32x32xf32> -> vector<32x32xf32>
    %70 = arith.truncf %69 : vector<32x32xf32> to vector<32x32xbf16>
    %71 = vector.extract_strided_slice %21 {offsets = [0, 64], sizes = [32, 32], strides = [1, 1]} : vector<32x128xf32> to vector<32x32xf32>
    %72 = arith.truncf %71 : vector<32x32xf32> to vector<32x32xbf16>
    %73 = vector.extract_strided_slice %22 {offsets = [0, 64], sizes = [32, 32], strides = [1, 1]} : vector<32x128xf32> to vector<32x32xf32>
    %74 = arith.truncf %73 : vector<32x32xf32> to vector<32x32xbf16>
    %75 = vector.extract_strided_slice %23 {offsets = [0, 64], sizes = [32, 32], strides = [1, 1]} : vector<32x128xf32> to vector<32x32xf32>
    %76 = arith.truncf %75 : vector<32x32xf32> to vector<32x32xbf16>
    %cst_23 = arith.constant dense<0.000000e+00> : vector<32x32xf32>
    %77 = tpu.matmul %72, %74, %cst_23 {dimension_numbers = #tpu.dot_dimension_numbers<[1], [1], [0], [0], [0, 0, 1, 0], [], []>} : vector<32x32xbf16>, vector<32x32xbf16>, vector<32x32xf32> -> vector<32x32xf32>
    %cst_24 = arith.constant -1.000000e+30 : f32
    %78 = vector.broadcast %cst_24 : f32 to vector<32x32xf32>
    %79 = arith.select %26, %77, %78 : vector<32x32xi1>, vector<32x32xf32>
    %cst_25 = arith.constant dense<0xFF800000> : vector<32xf32>
    %80 = vector.multi_reduction <maximumf>, %79, %cst_25 [1] : vector<32x32xf32> to vector<32xf32>
    %81 = vector.shape_cast %80 : vector<32xf32> to vector<32x1xf32>
    %82 = vector.broadcast %81 : vector<32x1xf32> to vector<32x32xf32>
    %83 = arith.subf %79, %82 : vector<32x32xf32>
    %84 = math.exp %83 : vector<32x32xf32>
    %cst_26 = arith.constant dense<0.000000e+00> : vector<32xf32>
    %85 = vector.multi_reduction <add>, %84, %cst_26 [1] : vector<32x32xf32> to vector<32xf32>
    %86 = vector.shape_cast %85 : vector<32xf32> to vector<32x1xf32>
    %87 = tpu.reciprocal %86 {approx = true} : vector<32x1xf32> -> vector<32x1xf32>
    %88 = vector.broadcast %87 : vector<32x1xf32> to vector<32x32xf32>
    %89 = arith.mulf %84, %88 : vector<32x32xf32>
    %90 = arith.truncf %89 : vector<32x32xf32> to vector<32x32xbf16>
    %cst_27 = arith.constant dense<0.000000e+00> : vector<32x32xf32>
    %91 = tpu.matmul %90, %76, %cst_27 {dimension_numbers = #tpu.dot_dimension_numbers<[1], [0], [0], [1], [0, 0, 1, 1], [], []>} : vector<32x32xbf16>, vector<32x32xbf16>, vector<32x32xf32> -> vector<32x32xf32>
    %92 = arith.truncf %91 : vector<32x32xf32> to vector<32x32xbf16>
    %93 = vector.extract_strided_slice %21 {offsets = [0, 96], sizes = [32, 32], strides = [1, 1]} : vector<32x128xf32> to vector<32x32xf32>
    %94 = arith.truncf %93 : vector<32x32xf32> to vector<32x32xbf16>
    %95 = vector.extract_strided_slice %22 {offsets = [0, 96], sizes = [32, 32], strides = [1, 1]} : vector<32x128xf32> to vector<32x32xf32>
    %96 = arith.truncf %95 : vector<32x32xf32> to vector<32x32xbf16>
    %97 = vector.extract_strided_slice %23 {offsets = [0, 96], sizes = [32, 32], strides = [1, 1]} : vector<32x128xf32> to vector<32x32xf32>
    %98 = arith.truncf %97 : vector<32x32xf32> to vector<32x32xbf16>
    %cst_28 = arith.constant dense<0.000000e+00> : vector<32x32xf32>
    %99 = tpu.matmul %94, %96, %cst_28 {dimension_numbers = #tpu.dot_dimension_numbers<[1], [1], [0], [0], [0, 0, 1, 0], [], []>} : vector<32x32xbf16>, vector<32x32xbf16>, vector<32x32xf32> -> vector<32x32xf32>
    %cst_29 = arith.constant -1.000000e+30 : f32
    %100 = vector.broadcast %cst_29 : f32 to vector<32x32xf32>
    %101 = arith.select %26, %99, %100 : vector<32x32xi1>, vector<32x32xf32>
    %cst_30 = arith.constant dense<0xFF800000> : vector<32xf32>
    %102 = vector.multi_reduction <maximumf>, %101, %cst_30 [1] : vector<32x32xf32> to vector<32xf32>
    %103 = vector.shape_cast %102 : vector<32xf32> to vector<32x1xf32>
    %104 = vector.broadcast %103 : vector<32x1xf32> to vector<32x32xf32>
    %105 = arith.subf %101, %104 : vector<32x32xf32>
    %106 = math.exp %105 : vector<32x32xf32>
    %cst_31 = arith.constant dense<0.000000e+00> : vector<32xf32>
    %107 = vector.multi_reduction <add>, %106, %cst_31 [1] : vector<32x32xf32> to vector<32xf32>
    %108 = vector.shape_cast %107 : vector<32xf32> to vector<32x1xf32>
    %109 = tpu.reciprocal %108 {approx = true} : vector<32x1xf32> -> vector<32x1xf32>
    %110 = vector.broadcast %109 : vector<32x1xf32> to vector<32x32xf32>
    %111 = arith.mulf %106, %110 : vector<32x32xf32>
    %112 = arith.truncf %111 : vector<32x32xf32> to vector<32x32xbf16>
    %cst_32 = arith.constant dense<0.000000e+00> : vector<32x32xf32>
    %113 = tpu.matmul %112, %98, %cst_32 {dimension_numbers = #tpu.dot_dimension_numbers<[1], [0], [0], [1], [0, 0, 1, 1], [], []>} : vector<32x32xbf16>, vector<32x32xbf16>, vector<32x32xf32> -> vector<32x32xf32>
    %114 = arith.truncf %113 : vector<32x32xf32> to vector<32x32xbf16>
    %115 = tpu.concatenate %48, %70, %92, %114 in 1 : vector<32x32xbf16>, vector<32x32xbf16>, vector<32x32xbf16>, vector<32x32xbf16> -> vector<32x128xbf16>
    %c0_33 = arith.constant 0 : index
    %c0_34 = arith.constant 0 : index
    %116 = vector.load %arg4[%c0_33, %c0_34] : memref<128x128xbf16, #tpu.memory_space<vmem>>, vector<128x128xbf16>
    %cst_35 = arith.constant dense<0.000000e+00> : vector<32x128xf32>
    %117 = tpu.matmul %115, %116, %cst_35 {dimension_numbers = #tpu.dot_dimension_numbers<[1], [0], [0], [1], [0, 0, 1, 1], [], []>} : vector<32x128xbf16>, vector<128x128xbf16>, vector<32x128xf32> -> vector<32x128xf32>
    %118 = arith.addf %4, %117 : vector<32x128xf32>
    %c0_36 = arith.constant 0 : index
    %c0_37 = arith.constant 0 : index
    %119 = vector.load %arg9[%c0_36, %c0_37] : memref<1x128xf32, #tpu.memory_space<vmem>>, vector<1x128xf32>
    %120 = arith.mulf %118, %118 : vector<32x128xf32>
    %cst_38 = arith.constant dense<0.000000e+00> : vector<32xf32>
    %121 = vector.multi_reduction <add>, %120, %cst_38 [1] : vector<32x128xf32> to vector<32xf32>
    %122 = vector.shape_cast %121 : vector<32xf32> to vector<32x1xf32>
    %cst_39 = arith.constant 1.280000e+02 : f32
    %123 = vector.broadcast %cst_39 : f32 to vector<32x1xf32>
    %124 = arith.divf %122, %123 : vector<32x1xf32>
    %cst_40 = arith.constant 9.99999997E-7 : f32
    %125 = vector.broadcast %cst_40 : f32 to vector<32x1xf32>
    %126 = arith.addf %124, %125 : vector<32x1xf32>
    %127 = math.rsqrt %126 : vector<32x1xf32>
    %128 = vector.broadcast %127 : vector<32x1xf32> to vector<32x128xf32>
    %129 = arith.mulf %118, %128 : vector<32x128xf32>
    %130 = vector.broadcast %119 : vector<1x128xf32> to vector<32x128xf32>
    %131 = arith.mulf %129, %130 : vector<32x128xf32>
    %132 = arith.truncf %131 : vector<32x128xf32> to vector<32x128xbf16>
    %c0_41 = arith.constant 0 : index
    %c0_42 = arith.constant 0 : index
    %133 = vector.load %arg5[%c0_41, %c0_42] : memref<128x512xbf16, #tpu.memory_space<vmem>>, vector<128x512xbf16>
    %cst_43 = arith.constant dense<0.000000e+00> : vector<32x512xf32>
    %134 = tpu.matmul %132, %133, %cst_43 {dimension_numbers = #tpu.dot_dimension_numbers<[1], [0], [0], [1], [0, 0, 1, 1], [], []>} : vector<32x128xbf16>, vector<128x512xbf16>, vector<32x512xf32> -> vector<32x512xf32>
    %135 = vector.extract_strided_slice %134 {offsets = [0, 0], sizes = [32, 256], strides = [1, 1]} : vector<32x512xf32> to vector<32x256xf32>
    %136 = vector.extract_strided_slice %134 {offsets = [0, 256], sizes = [32, 256], strides = [1, 1]} : vector<32x512xf32> to vector<32x256xf32>
    %137 = arith.negf %135 : vector<32x256xf32>
    %138 = math.exp %137 : vector<32x256xf32>
    %cst_44 = arith.constant 1.000000e+00 : f32
    %139 = vector.broadcast %cst_44 : f32 to vector<32x256xf32>
    %140 = arith.addf %139, %138 : vector<32x256xf32>
    %141 = arith.divf %139, %140 : vector<32x256xf32>
    %142 = arith.mulf %135, %141 : vector<32x256xf32>
    %143 = arith.mulf %142, %136 : vector<32x256xf32>
    %144 = arith.truncf %143 : vector<32x256xf32> to vector<32x256xbf16>
    %c0_45 = arith.constant 0 : index
    %c0_46 = arith.constant 0 : index
    %145 = vector.load %arg6[%c0_45, %c0_46] : memref<256x128xbf16, #tpu.memory_space<vmem>>, vector<256x128xbf16>
    %cst_47 = arith.constant dense<0.000000e+00> : vector<32x128xf32>
    %146 = tpu.matmul %144, %145, %cst_47 {dimension_numbers = #tpu.dot_dimension_numbers<[1], [0], [0], [1], [0, 0, 1, 1], [], []>} : vector<32x256xbf16>, vector<256x128xbf16>, vector<32x128xf32> -> vector<32x128xf32>
    %147 = arith.addf %118, %146 : vector<32x128xf32>
    %c0_48 = arith.constant 0 : index
    %c0_49 = arith.constant 0 : index
    %148 = vector.load %arg10[%c0_48, %c0_49] : memref<1x128xf32, #tpu.memory_space<vmem>>, vector<1x128xf32>
    %149 = arith.mulf %147, %147 : vector<32x128xf32>
    %cst_50 = arith.constant dense<0.000000e+00> : vector<32xf32>
    %150 = vector.multi_reduction <add>, %149, %cst_50 [1] : vector<32x128xf32> to vector<32xf32>
    %151 = vector.shape_cast %150 : vector<32xf32> to vector<32x1xf32>
    %cst_51 = arith.constant 1.280000e+02 : f32
    %152 = vector.broadcast %cst_51 : f32 to vector<32x1xf32>
    %153 = arith.divf %151, %152 : vector<32x1xf32>
    %cst_52 = arith.constant 9.99999997E-7 : f32
    %154 = vector.broadcast %cst_52 : f32 to vector<32x1xf32>
    %155 = arith.addf %153, %154 : vector<32x1xf32>
    %156 = math.rsqrt %155 : vector<32x1xf32>
    %157 = vector.broadcast %156 : vector<32x1xf32> to vector<32x128xf32>
    %158 = arith.mulf %147, %157 : vector<32x128xf32>
    %159 = vector.broadcast %148 : vector<1x128xf32> to vector<32x128xf32>
    %160 = arith.mulf %158, %159 : vector<32x128xf32>
    %161 = arith.truncf %160 : vector<32x128xf32> to vector<32x128xbf16>
    %c0_53 = arith.constant 0 : index
    %c0_54 = arith.constant 0 : index
    %162 = vector.load %arg7[%c0_53, %c0_54] : memref<128x256xbf16, #tpu.memory_space<vmem>>, vector<128x256xbf16>
    %cst_55 = arith.constant dense<0.000000e+00> : vector<32x256xf32>
    %163 = tpu.matmul %161, %162, %cst_55 {dimension_numbers = #tpu.dot_dimension_numbers<[1], [0], [0], [1], [0, 0, 1, 1], [], []>} : vector<32x128xbf16>, vector<128x256xbf16>, vector<32x256xf32> -> vector<32x256xf32>
    %c0_56 = arith.constant 0 : index
    %c0_57 = arith.constant 0 : index
    %164 = vector.load %arg11[%c0_56, %c0_57] : memref<32x1xi32, #tpu.memory_space<vmem>>, vector<32x1xi32>
    %cst_58 = arith.constant dense<0xFF800000> : vector<32xf32>
    %165 = vector.multi_reduction <maximumf>, %163, %cst_58 [1] : vector<32x256xf32> to vector<32xf32>
    %166 = vector.shape_cast %165 : vector<32xf32> to vector<32x1xf32>
    %167 = vector.broadcast %166 : vector<32x1xf32> to vector<32x256xf32>
    %168 = arith.subf %163, %167 : vector<32x256xf32>
    %169 = math.exp %168 : vector<32x256xf32>
    %cst_59 = arith.constant dense<0.000000e+00> : vector<32xf32>
    %170 = vector.multi_reduction <add>, %169, %cst_59 [1] : vector<32x256xf32> to vector<32xf32>
    %171 = vector.shape_cast %170 : vector<32xf32> to vector<32x1xf32>
    %172 = math.log %171 : vector<32x1xf32>
    %173 = tpu.iota {dimensions = array<i32: 1>} : vector<32x256xi32>
    %174 = vector.broadcast %164 : vector<32x1xi32> to vector<32x256xi32>
    %175 = arith.cmpi eq, %173, %174 : vector<32x256xi32>
    %cst_60 = arith.constant 0.000000e+00 : f32
    %176 = vector.broadcast %cst_60 : f32 to vector<32x256xf32>
    %177 = arith.select %175, %168, %176 : vector<32x256xi1>, vector<32x256xf32>
    %cst_61 = arith.constant dense<0.000000e+00> : vector<32xf32>
    %178 = vector.multi_reduction <add>, %177, %cst_61 [1] : vector<32x256xf32> to vector<32xf32>
    %179 = vector.shape_cast %178 : vector<32xf32> to vector<32x1xf32>
    %c-200_i32 = arith.constant -200 : i32
    %180 = vector.broadcast %c-200_i32 : i32 to vector<32x1xi32>
    %181 = arith.cmpi ne, %164, %180 : vector<32x1xi32>
    %182 = arith.extui %181 : vector<32x1xi1> to vector<32x1xi32>
    %183 = arith.sitofp %182 : vector<32x1xi32> to vector<32x1xf32>
    %184 = arith.subf %172, %179 : vector<32x1xf32>
    %185 = arith.mulf %184, %183 : vector<32x1xf32>
    %186 = vector.shape_cast %185 : vector<32x1xf32> to vector<1x32x1xf32>
    %cst_62 = arith.constant dense<0.000000e+00> : vector<1xf32>
    %187 = vector.multi_reduction <add>, %186, %cst_62 [1, 2] : vector<1x32x1xf32> to vector<1xf32>
    %188 = vector.shape_cast %187 : vector<1xf32> to vector<1x1x1xf32>
    %189 = vector.extract %188[0, 0, 0] : f32 from vector<1x1x1xf32>
    %190 = vector.shape_cast %183 : vector<32x1xf32> to vector<1x32x1xf32>
    %cst_63 = arith.constant dense<0.000000e+00> : vector<1xf32>
    %191 = vector.multi_reduction <add>, %190, %cst_63 [1, 2] : vector<1x32x1xf32> to vector<1xf32>
    %192 = vector.shape_cast %191 : vector<1xf32> to vector<1x1x1xf32>
    %193 = vector.extract %192[0, 0, 0] : f32 from vector<1x1x1xf32>
    %cst_64 = arith.constant 1.000000e+00 : f32
    %194 = arith.maximumf %193, %cst_64 : f32
    %195 = arith.divf %189, %194 : f32
    %c0_65 = arith.constant 0 : index
    %c0_66 = arith.constant 0 : index
    %196 = memref.load %arg12[%c0_65, %c0_66] : memref<1x1xf32, #tpu.memory_space<smem>>
    memref.store %195, %arg12[%c0_65, %c0_66] : memref<1x1xf32, #tpu.memory_space<smem>>
    return
  }
}

</mosaic_0001>

<bundles_post_ra>
// kernel: tpu_custom_call.1
= control target key start
LH: loop header
LB: loop body
LE: loop exit
PB: predicated region body
PF: predicated region fallthrough
CT: control target
= control target key end

     0   :  { %17 = vsyncpa [#allocation3], 0  ;;  %s3964_s0 = inlined_call_operand.vmem [shape: bf16[32,192], index: 0, kind: input, shape index: {}]   ;;  %s3965_s1 = inlined_call_operand.hbm [shape: bf16[192,128], index: 1, kind: input, shape index: {}]   ;;  %s3966_s2 = inlined_call_operand.hbm [shape: f32[32,128], index: 2, kind: input, shape index: {}]   ;;  %s3967_s3 = inlined_call_operand.hbm [shape: bf16[128,384], index: 3, kind: input, shape index: {}]   ;;  %s3968_s4 = inlined_call_operand.hbm [shape: bf16[128,128], index: 4, kind: input, shape index: {}]   ;;  %s3969_s5 = inlined_call_operand.hbm [shape: bf16[128,512], index: 5, kind: input, shape index: {}]   ;;  %s3970_s6 = inlined_call_operand.hbm [shape: bf16[256,128], index: 6, kind: input, shape index: {}]   ;;  %s3971_s7 = inlined_call_operand.hbm [shape: bf16[128,256], index: 7, kind: input, shape index: {}]   ;;  %s3972_s8 = inlined_call_operand.vmem [shape: f32[1,128], index: 8, kind: input, shape index: {}]   ;;  %s3973_s9 = inlined_call_operand.vmem [shape: f32[1,128], index: 9, kind: input, shape index: {}]   ;;  %s3974_s10 = inlined_call_operand.vmem [shape: f32[1,128], index: 10, kind: input, shape index: {}]   ;;  %s3975_s11 = inlined_call_operand.vmem [shape: s32[32,1], index: 11, kind: input, shape index: {}]   ;;  %s3976_s12 = inlined_call_operand.hbm [shape: f32[1,1], index: 12, kind: output, shape index: {}]  }
   0x1   :  { %18 = vsyncpa [#allocation6], 0 }
   0x2   :  { %19 = vsyncpa [#allocation9], 0 }
   0x3   :  { %20 = vsyncpa [#allocation12], 0 }
   0x4   :  { %21 = vsyncpa [#allocation4], 0  ;;  %s3302_s21 = smov [#allocation5]   ;;  %s3128_s25 = scalar_lea.hbm %s3966_s2, 512 }
   0x5   :  { %s41_s22 = sshll.u32 %s3302_s21, 4  ;;  %p3129_p0 = scmp.ne.s32.totalorder %s3966_s2, %s3128_s25  ;;  %s42_s22 = int_to_ptr.vmem [resolvable:$true] %s41_s22 }
   0x6   :  { %p3132_p1 = scmp.lt.u32.totalorder %s3128_s25, %s3966_s2 }
   0x8   :  { %p3134_p2 = pnand %p3132_p1, %p3129_p0 }
   0xa   :  { %3137 = shalt.err (!%p3134_p2)
}
   0xb   :  { %s3138_s30 = scalar_lea.vmem %s42_s22, 512  ;;  %p3143_p4 = scmp.lt.s32.totalorder %s42_s22, %s42_s22 }
   0xc   :  { %p3139_p3 = scmp.ne.s32.totalorder %s42_s22, %s3138_s30  ;;  %p3144_p5 = scmp.lt.s32.totalorder %s3138_s30, %s3138_s30 }
   0xe   :  { %p3145_p6 = por %p3144_p5, %p3143_p4 }
  0x10   :  { %p3146_p7 = pnand %p3145_p6, %p3139_p3 }
  0x12   :  { %3149 = shalt.err (!%p3146_p7)
}
  0x13   :  { %s3303_s13 = smov 128   ;;  %s3304_s14 = smov 8  }
  0x14   :  { %47 = dma.hbm_to_vmem [thread:$0]  %s3966_s2, 512, %s42_s22, [#allocation6], %s3303_s13, %s3303_s13, %s3304_s14  }
  0x15   :  { %s3305_s17 = smov [#allocation8]   ;;  %s3306_s19 = smov [#allocation11]  }
  0x16   :  { %s65_s18 = sshll.u32 %s3305_s17, 4  ;;  %s89_s20 = sshll.u32 %s3306_s19, 4  ;;  %s66_s18 = int_to_ptr.vmem [resolvable:$true] %s65_s18  ;;  %s90_s20 = int_to_ptr.vmem [resolvable:$true] %s89_s20 }
  0x17   :  { %s3150_s24 = scalar_lea.hbm %s3968_s4, 1024 }
  0x18   :  { %p3151_p8 = scmp.ne.s32.totalorder %s3968_s4, %s3150_s24  ;;  %p3154_p9 = scmp.lt.u32.totalorder %s3150_s24, %s3968_s4 }
  0x1a   :  { %p3156_p10 = pnand %p3154_p9, %p3151_p8 }
  0x1c   :  { %3159 = shalt.err (!%p3156_p10)
}
  0x1d   :  { %s3160_s2 = scalar_lea.vmem %s66_s18, 1024  ;;  %p3165_p12 = scmp.lt.s32.totalorder %s66_s18, %s66_s18 }
  0x1e   :  { %p3161_p11 = scmp.ne.s32.totalorder %s66_s18, %s3160_s2  ;;  %p3166_p13 = scmp.lt.s32.totalorder %s3160_s2, %s3160_s2 }
  0x20   :  { %p3167_p0 = por %p3166_p13, %p3165_p12 }
  0x22   :  { %p3168_p1 = pnand %p3167_p0, %p3161_p11 }
  0x24   :  { %3171 = shalt.err (!%p3168_p1)
}
  0x25   :  { %s3307_s22 = smov 64   ;;  %s3308_s29 = smov 4  }
  0x26   :  { %71 = dma.hbm_to_vmem [thread:$0]  %s3968_s4, 1024, %s66_s18, [#allocation9], %s3307_s22, %s3307_s22, %s3308_s29  }
  0x27   :  { %s3172_s19 = scalar_lea.hbm %s3970_s6, 2048 }
  0x28   :  { %p3173_p2 = scmp.ne.s32.totalorder %s3970_s6, %s3172_s19  ;;  %p3176_p3 = scmp.lt.u32.totalorder %s3172_s19, %s3970_s6 }
  0x2a   :  { %p3178_p4 = pnand %p3176_p3, %p3173_p2 }
  0x2c   :  { %3181 = shalt.err (!%p3178_p4)
}
  0x2d   :  { %s3182_s26 = scalar_lea.vmem %s90_s20, 2048  ;;  %p3187_p6 = scmp.lt.s32.totalorder %s90_s20, %s90_s20 }
  0x2e   :  { %p3183_p5 = scmp.ne.s32.totalorder %s90_s20, %s3182_s26  ;;  %p3188_p7 = scmp.lt.s32.totalorder %s3182_s26, %s3182_s26 }
  0x30   :  { %p3189_p8 = por %p3188_p7, %p3187_p6 }
  0x32   :  { %p3190_p9 = pnand %p3189_p8, %p3183_p5 }
  0x34   :  { %3193 = shalt.err (!%p3190_p9)
}
  0x35   :  { %95 = dma.hbm_to_vmem [thread:$0]  %s3970_s6, 2048, %s90_s20, [#allocation12], %s3307_s22, %s3307_s22, %s3308_s29  }
  0x36   :  { %s3309_s27 = smov [#allocation2]   ;;  %s3310_s2 = smov [#allocation7]  }
  0x37   :  { %s29_s28 = sshll.u32 %s3309_s27, 4  ;;  %s53_s30 = sshll.u32 %s3310_s2, 4  ;;  %s30_s28 = int_to_ptr.vmem [resolvable:$true] %s29_s28  ;;  %s54_s30 = int_to_ptr.vmem [resolvable:$true] %s53_s30 }
  0x38   :  { %s3194_s17 = scalar_lea.hbm %s3965_s1, 1536 }
  0x39   :  { %p3195_p10 = scmp.ne.s32.totalorder %s3965_s1, %s3194_s17  ;;  %p3198_p11 = scmp.lt.u32.totalorder %s3194_s17, %s3965_s1 }
  0x3b   :  { %p3200_p12 = pnand %p3198_p11, %p3195_p10 }
  0x3d   :  { %3203 = shalt.err (!%p3200_p12)
}
  0x3e   :  { %s3204_s6 = scalar_lea.vmem %s30_s28, 1536  ;;  %p3209_p0 = scmp.lt.s32.totalorder %s30_s28, %s30_s28 }
  0x3f   :  { %p3205_p13 = scmp.ne.s32.totalorder %s30_s28, %s3204_s6  ;;  %p3210_p1 = scmp.lt.s32.totalorder %s3204_s6, %s3204_s6 }
  0x41   :  { %p3211_p2 = por %p3210_p1, %p3209_p0 }
  0x43   :  { %p3212_p3 = pnand %p3211_p2, %p3205_p13 }
  0x45   :  { %3215 = shalt.err (!%p3212_p3)
}
  0x46   :  { %35 = dma.hbm_to_vmem [thread:$0]  %s3965_s1, 1536, %s30_s28, [#allocation3], %s3307_s22, %s3307_s22, %s3308_s29  }
  0x47   :  { %s3216_s18 = scalar_lea.hbm %s3967_s3, 3072 }
  0x48   :  { %p3217_p4 = scmp.ne.s32.totalorder %s3967_s3, %s3216_s18  ;;  %p3220_p5 = scmp.lt.u32.totalorder %s3216_s18, %s3967_s3 }
  0x4a   :  { %p3222_p6 = pnand %p3220_p5, %p3217_p4 }
  0x4c   :  { %3225 = shalt.err (!%p3222_p6)
}
  0x4d   :  { %s3226_s17 = scalar_lea.vmem %s54_s30, 3072  ;;  %p3231_p8 = scmp.lt.s32.totalorder %s54_s30, %s54_s30 }
  0x4e   :  { %p3227_p7 = scmp.ne.s32.totalorder %s54_s30, %s3226_s17  ;;  %p3232_p9 = scmp.lt.s32.totalorder %s3226_s17, %s3226_s17 }
  0x50   :  { %p3233_p10 = por %p3232_p9, %p3231_p8 }
  0x52   :  { %p3234_p11 = pnand %p3233_p10, %p3227_p7 }
  0x54   :  { %3237 = shalt.err (!%p3234_p11)
}
  0x55   :  { %s3311_s1 = smov 192   ;;  %s3312_s29 = smov 12  }
  0x56   :  { %59 = dma.hbm_to_vmem [thread:$0]  %s3967_s3, 3072, %s54_s30, [#allocation6], %s3311_s1, %s3311_s1, %s3312_s29  }
  0x57   :  { %s3313_s21 = smov [#allocation10]   ;;  %s3238_s20 = scalar_lea.hbm %s3969_s5, 4096 }
  0x58   :  { %s77_s23 = sshll.u32 %s3313_s21, 4  ;;  %p3239_p12 = scmp.ne.s32.totalorder %s3969_s5, %s3238_s20  ;;  %s78_s23 = int_to_ptr.vmem [resolvable:$true] %s77_s23 }
  0x59   :  { %p3242_p13 = scmp.lt.u32.totalorder %s3238_s20, %s3969_s5 }
  0x5b   :  { %p3244_p0 = pnand %p3242_p13, %p3239_p12 }
  0x5d   :  { %3247 = shalt.err (!%p3244_p0)
}
  0x5e   :  { %s3248_s27 = scalar_lea.vmem %s78_s23, 4096  ;;  %p3253_p2 = scmp.lt.s32.totalorder %s78_s23, %s78_s23 }
  0x5f   :  { %p3249_p1 = scmp.ne.s32.totalorder %s78_s23, %s3248_s27  ;;  %p3254_p3 = scmp.lt.s32.totalorder %s3248_s27, %s3248_s27 }
  0x61   :  { %p3255_p4 = por %p3254_p3, %p3253_p2 }
  0x63   :  { %p3256_p5 = pnand %p3255_p4, %p3249_p1 }
  0x65   :  { %3259 = shalt.err (!%p3256_p5)
}
  0x66   :  { %s3314_s3 = smov 256   ;;  %s3315_s30 = smov 16  }
  0x67   :  { %83 = dma.hbm_to_vmem [thread:$0]  %s3969_s5, 4096, %s78_s23, [#allocation9], %s3314_s3, %s3314_s3, %s3315_s30  }
  0x68   :  { %s3316_s16 = smov [#allocation13]   ;;  %s3260_s28 = scalar_lea.hbm %s3971_s7, 2048 }
  0x69   :  { %s101_s17 = sshll.u32 %s3316_s16, 4  ;;  %p3261_p6 = scmp.ne.s32.totalorder %s3971_s7, %s3260_s28  ;;  %s102_s17 = int_to_ptr.vmem [resolvable:$true] %s101_s17 }
  0x6a   :  { %p3264_p7 = scmp.lt.u32.totalorder %s3260_s28, %s3971_s7 }
  0x6c   :  { %p3266_p8 = pnand %p3264_p7, %p3261_p6 }
  0x6e   :  { %3269 = shalt.err (!%p3266_p8)
}
  0x6f   :  { %s3270_s20 = scalar_lea.vmem %s102_s17, 2048  ;;  %p3275_p10 = scmp.lt.s32.totalorder %s102_s17, %s102_s17 }
  0x70   :  { %p3271_p9 = scmp.ne.s32.totalorder %s102_s17, %s3270_s20  ;;  %p3276_p11 = scmp.lt.s32.totalorder %s3270_s20, %s3270_s20 }
  0x72   :  { %p3277_p12 = por %p3276_p11, %p3275_p10 }
  0x74   :  { %p3278_p13 = pnand %p3277_p12, %p3271_p9 }
  0x76   :  { %3281 = shalt.err (!%p3278_p13)
}
  0x77   :  { %107 = dma.hbm_to_vmem [thread:$0]  %s3971_s7, 2048, %s102_s17, [#allocation12], %s3303_s13, %s3303_s13, %s3304_s14  }
  0x78   :  { %3292 = dma.done.wait [#allocation3], 1536  }
  0x79   :  { %3293 = vsyncadd [#allocation3], 4294965760 }
  0x7a   :  { %3294 = dma.done.wait [#allocation6], 3584  }
  0x7b   :  { %3295 = vsyncadd [#allocation6], 4294963712 }
  0x7c   :  { %3296 = dma.done.wait [#allocation9], 5120  }
  0x7d   :  { %3297 = vsyncadd [#allocation9], 4294962176 }
  0x7e   :  { %3298 = dma.done.wait [#allocation12], 4096  }
  0x7f   :  { %3299 = vsyncadd [#allocation12], 4294963200  ;;  %v3317_v0 = vmov 0   ;;  %v2836_v1 = vld [vmem:[#allocation2] sm:$0xff]   ;;  %v2837_v2 = vld [vmem:[#allocation2 + $0x8] sm:$0xff]   ;;  %vm256_vm0 = vcmask 523264  }
  0x80   :  { %263 = vmatprep.subr.bf16.mxu0 %v3317_v0  ;;  %554 = vmatprep.mubr.bf16.mxu1 %v3317_v0  ;;  %v2838_v3 = vld [vmem:[#allocation2 + $0x10] sm:$0xff]   ;;  %v2839_v4 = vld [vmem:[#allocation2 + $0x18] sm:$0xff]   ;;  %v2850_v5 = vld [vmem:[%s3964_s0 + $0x4] ss:$8 sps:$4 sm:$0xff]   ;;  %vm641_vm1 = vcmask 261120   ;;  %s3319_s30 = smov 32  }
  0x81   :  { %2835 = vset.pattern.permute.xlu1 %v3317_v0  ;;  %2834 = vset.pattern.permute.xlu0 %v3317_v0  ;;  %v2840_v6 = vld [vmem:[#allocation2 + $0x20] sm:$0xff]   ;;  %v2841_v7 = vld [vmem:[#allocation2 + $0x28] sm:$0xff]   ;;  %v2842_v8 = vld [vmem:[#allocation2 + $0x30] sm:$0xff]   ;;  %vm1390_vm6 = vcmask 785408   ;;  %s3321_s6 = smov 1.0   ;;  %s3282_s14 = scalar_lea.hbm %s3976_s12, 16 }
  0x82   :  { %264 = vmatpush1.bf16.msra.mxu0 %v2836_v1  ;;  %2486 = vmatprep.mubr.msk.bf16.mxu0 %vm256_vm0, %v2850_v5  ;;  %v2843_v9 = vld [vmem:[#allocation2 + $0x38] sm:$0xff]   ;;  %v2844_v10 = vld [vmem:[#allocation2 + $0x40] sm:$0xff]   ;;  %v2845_v11 = vld [vmem:[#allocation2 + $0x48] sm:$0xff]   ;;  %p3283_p0 = scmp.ne.s32.totalorder %s3976_s12, %s3282_s14  ;;  %p3286_p1 = scmp.lt.u32.totalorder %s3282_s14, %s3976_s12 }
  0x83   :  { %265 = vmatprep.subr.bf16.mxu0 %v3317_v0  ;;  %v2846_v12 = vld [vmem:[#allocation2 + $0x50] sm:$0xff]   ;;  %v2847_v13 = vld [vmem:[#allocation2 + $0x58] sm:$0xff]   ;;  %v2848_v14 = vld [vmem:[%s3964_s0] ss:$8 sps:$4 sm:$0xff]  }
  0x84   :  { %v2851_v15 = vld [vmem:[%s3964_s0 + $0x14] ss:$8 sps:$4 sm:$0xff]   ;;  %v2853_v16 = vld [vmem:[%s3964_s0 + $0x10] ss:$8 sps:$4 sm:$0xff]   ;;  %v2856_v18 = vld [vmem:[#allocation7] ss:$12 sps:$4 sm:$0xff]   ;;  %p3288_p2 = pnand %p3286_p1, %p3283_p0 }
  0x85   :  { %v2854_v17 = vld [vmem:[#allocation7 + $0x4] ss:$12 sps:$4 sm:$0xff]   ;;  %v2857_v19 = vld [vmem:[#allocation7 + $0x1c] ss:$12 sps:$4 sm:$0xff]   ;;  %v2860_v41 = vld [vmem:[#allocation7 + $0x34] ss:$12 sps:$4 sm:$0xff]  }
  0x86   :  { %266 = vmatpush1.bf16.msra.mxu0 %v2837_v2  ;;  %522 = vmatprep.subr.bf16.mxu1 %v2854_v17  ;;  %v2859_v20 = vld [vmem:[#allocation7 + $0x18] ss:$12 sps:$4 sm:$0xff]   ;;  %v313_v23 = vld [vmem:[#allocation5 + $0x8] sm:$0xff]  ;;  %v314_v30 = vld [vmem:[#allocation5 + $0x10] sm:$0xff] }
  0x87   :  { %267 = vmatprep.subr.bf16.mxu0 %v3317_v0  ;;  %523 = vmatpush1.bf16.msra.mxu1 %v2856_v18  ;;  %v312_v21 = vld [vmem:[#allocation5] sm:$0xff]  ;;  %v315_v33 = vld [vmem:[#allocation5 + $0x18] sm:$0xff]  ;;  %v2865_v44 = vld [vmem:[#allocation7 + $0x48] ss:$12 sps:$4 sm:$0xff]  }
  0x88   :  { %524 = vmatprep.subr.bf16.mxu1 %v2857_v19  ;;  %v2862_v42 = vld [vmem:[#allocation7 + $0x30] ss:$12 sps:$4 sm:$0xff]   ;;  %v2863_v43 = vld [vmem:[#allocation7 + $0x4c] ss:$12 sps:$4 sm:$0xff]   ;;  %v2872_v49 = vld [vmem:[#allocation7 + $0x94] ss:$12 sps:$4 sm:$0xff]  }
  0x89   :  { %v2866_v45 = vld [vmem:[#allocation7 + $0x64] ss:$12 sps:$4 sm:$0xff]   ;;  %v2868_v46 = vld [vmem:[#allocation7 + $0x60] ss:$12 sps:$4 sm:$0xff]   ;;  %v2869_v47 = vld [vmem:[#allocation7 + $0x7c] ss:$12 sps:$4 sm:$0xff]  }
  0x8a   :  { %268 = vmatpush1.bf16.msra.mxu0 %v2838_v3  ;;  %v2871_v48 = vld [vmem:[#allocation7 + $0x78] ss:$12 sps:$4 sm:$0xff]   ;;  %v2874_v50 = vld [vmem:[#allocation7 + $0x90] ss:$12 sps:$4 sm:$0xff]   ;;  %v2877_v52 = vld [vmem:[#allocation7 + $0xa8] ss:$12 sps:$4 sm:$0xff]  }
  0x8b   :  { %269 = vmatprep.subr.bf16.mxu0 %v3317_v0  ;;  %525 = vmatpush1.bf16.msra.mxu1 %v2859_v20  ;;  %v2875_v51 = vld [vmem:[#allocation7 + $0xac] ss:$12 sps:$4 sm:$0xff]   ;;  %v2878_v53 = vld [vmem:[#allocation7 + $0x8] ss:$12 sps:$4 sm:$0xff]   ;;  %v2881_v20 = vld [vmem:[#allocation7 + $0x50] ss:$12 sps:$4 sm:$0xff]  }
  0x8c   :  { %526 = vmatprep.subr.bf16.mxu1 %v2860_v41 }
  0x8e   :  { %270 = vmatpush1.bf16.msra.mxu0 %v2839_v4 }
  0x8f   :  { %271 = vmatprep.subr.bf16.mxu0 %v3317_v0  ;;  %527 = vmatpush1.bf16.msra.mxu1 %v2862_v42 }
  0x90   :  { %528 = vmatprep.subr.bf16.mxu1 %v2863_v43 }
  0x92   :  { %272 = vmatpush1.bf16.msra.mxu0 %v2840_v6  ;;  %v2488_v6 = vld [vmem:[%s3972_s8] ss:$0 sm:$0xff]  ;;  %s3318_s8 = smov 96  }
  0x93   :  { %273 = vmatprep.subr.bf16.mxu0 %v3317_v0  ;;  %529 = vmatpush1.bf16.msra.mxu1 %v2865_v44 }
  0x94   :  { %530 = vmatprep.subr.bf16.mxu1 %v2866_v45 }
  0x96   :  { %274 = vmatpush1.bf16.msra.mxu0 %v2841_v7 }
  0x97   :  { %275 = vmatprep.subr.bf16.mxu0 %v3317_v0  ;;  %531 = vmatpush1.bf16.msra.mxu1 %v2868_v46 }
  0x98   :  { %532 = vmatprep.subr.bf16.mxu1 %v2869_v47 }
  0x9a   :  { %276 = vmatpush1.bf16.msra.mxu0 %v2842_v8 }
  0x9b   :  { %277 = vmatprep.subr.bf16.mxu0 %v3317_v0  ;;  %533 = vmatpush1.bf16.msra.mxu1 %v2871_v48 }
  0x9c   :  { %534 = vmatprep.subr.bf16.mxu1 %v2872_v49 }
  0x9e   :  { %278 = vmatpush1.bf16.msra.mxu0 %v2843_v9 }
  0x9f   :  { %279 = vmatprep.subr.bf16.mxu0 %v3317_v0  ;;  %535 = vmatpush1.bf16.msra.mxu1 %v2874_v50 }
  0xa0   :  { %536 = vmatprep.subr.bf16.mxu1 %v2875_v51 }
  0xa2   :  { %280 = vmatpush1.bf16.msra.mxu0 %v2844_v10 }
  0xa3   :  { %281 = vmatprep.subr.bf16.mxu0 %v3317_v0  ;;  %537 = vmatpush1.bf16.msra.mxu1 %v2877_v52 }
  0xa4   :  { %2695 = vmatprep.subr.bf16.mxu1 %v2878_v53 }
  0xa6   :  { %282 = vmatpush1.bf16.msra.mxu0 %v2845_v11 }
  0xa7   :  { %283 = vmatprep.subr.bf16.mxu0 %v3317_v0 }
  0xaa   :  { %284 = vmatpush1.bf16.msra.mxu0 %v2846_v12  ;;  %v2879_v12 = vld [vmem:[#allocation7 + $0x20] ss:$12 sps:$4 sm:$0xff]  }
  0xab   :  { %285 = vmatprep.subr.bf16.mxu0 %v3317_v0 }
  0xae   :  { %286 = vmatpush1.bf16.msra.mxu0 %v2847_v13 }
  0xb1   :  { %296 = vmatmul.mubr.bf16.vlgmr.msra.gmra.mrb[0].mxu0 %v2848_v14 }
  0xb2   :  { %2487 = vmatprep.mubr.msk.bf16.mxu0 %vm256_vm0, %v2851_v15  ;;  %v2880_v15 = vld [vmem:[#allocation7 + $0x38] ss:$12 sps:$4 sm:$0xff]  }
  0xb9   :  { %304 = vmatmul.mubr.bf16.gmra.mrb[4].mxu0 %v2853_v16 }
 0x184   :  { %v297_v22 = vpop.f32.mrb[0].mxu0 }
 0x185   :  { %v3516_v24 = vadd.f32 %v312_v21, %v297_v22  ;;  %v299_v25 = vpop.f32.mrb[1].mxu0  ;;  %v2882_v21 = vld [vmem:[#allocation7 + $0x68] ss:$12 sps:$4 sm:$0xff]   ;;  %v2883_v22 = vld [vmem:[#allocation7 + $0x80] ss:$12 sps:$4 sm:$0xff]  }
 0x186   :  { %v300_v26 = vpop.f32.mrb[2].mxu0  ;;  %v2885_v25 = vld [vmem:[#allocation7 + $0xb0] ss:$12 sps:$4 sm:$0xff]  }
 0x187   :  { %v3518_v27 = vadd.f32 %v313_v23, %v300_v26  ;;  %v302_v28 = vpop.f32.mrb[3].mxu0  ;;  %v321_v29 = vmul.f32 %v3516_v24, %v3516_v24  ;;  %v2884_v23 = vld [vmem:[#allocation7 + $0x98] ss:$12 sps:$4 sm:$0xff]  }
 0x189   :  { %325 = vadd.xlane.f32.xlu0 %v321_v29  ;;  %v322_v31 = vmul.f32 %v3518_v27, %v3518_v27 }
 0x18c   :  { %v305_v32 = vpop.f32.mrb[4].mxu0 }
 0x18d   :  { %v3524_v34 = vadd.f32 %v314_v30, %v305_v32  ;;  %327 = vadd.xlane.f32.xlu0 %v322_v31  ;;  %v307_v35 = vpop.f32.mrb[5].mxu0 }
 0x18e   :  { %v308_v36 = vpop.f32.mrb[6].mxu0 }
 0x18f   :  { %v3526_v37 = vadd.f32 %v315_v33, %v308_v36  ;;  %v310_v38 = vpop.f32.mrb[7].mxu0  ;;  %v323_v39 = vmul.f32 %v3524_v34, %v3524_v34 }
 0x191   :  { %329 = vadd.xlane.f32.xlu1 %v323_v39  ;;  %v324_v40 = vmul.f32 %v3526_v37, %v3526_v37 }
 0x195   :  { %331 = vadd.xlane.f32.xlu1 %v324_v40 }
 0x216   :  { %v326_v54 = vpop.xlane.xlu0 %325 }
 0x217   :  { %v334_v55 = vmul.f32 0.0078125, %v326_v54 }
 0x219   :  { %v338_v56 = vadd.f32 1e-06, %v334_v55 }
 0x21a   :  { %v328_v57 = vpop.xlane.xlu0 %327 }
 0x21b   :  { %2982 = vrsqrt.f32 %v338_v56  ;;  %v335_v58 = vmul.f32 0.0078125, %v328_v57 }
 0x21d   :  { %v339_v59 = vadd.f32 1e-06, %v335_v58 }
 0x21e   :  { %v330_v60 = vpop.xlane.xlu1 %329 }
 0x21f   :  { %2984 = vrsqrt.f32 %v339_v59  ;;  %v336_v61 = vmul.f32 0.0078125, %v330_v60 }
 0x221   :  { %v340_v62 = vadd.f32 1e-06, %v336_v61 }
 0x222   :  { %v332_v63 = vpop.xlane.xlu1 %331 }
 0x223   :  { %2986 = vrsqrt.f32 %v340_v62  ;;  %v337_v1 = vmul.f32 0.0078125, %v332_v63 }
 0x225   :  { %v2983_v2 = vpop.eup %2982  ;;  %v341_v3 = vadd.f32 1e-06, %v337_v1 }
 0x226   :  { %v346_v4 = vmul.f32 %v2983_v2, %v3516_v24 }
 0x227   :  { %2988 = vrsqrt.f32 %v341_v3 }
 0x228   :  { %v356_v8 = vmul.f32 %v2488_v6, %v346_v4 }
 0x229   :  { %v2985_v5 = vpop.eup %2984 }
 0x22a   :  { %v347_v7 = vmul.f32 %v2985_v5, %v3518_v27 }
 0x22c   :  { %v357_v9 = vmul.f32 %v2488_v6, %v347_v7 }
 0x22d   :  { %v2987_v10 = vpop.eup %2986 }
 0x22e   :  { %v360_v11 = vpack.c.bf16 %v357_v9, %v356_v8  ;;  %v348_v13 = vmul.f32 %v2987_v10, %v3524_v34 }
 0x230   :  { %555 = vmatmul.mubr.bf16.vlgmr.msra.gmra.mrb[0].mxu1 %v360_v11  ;;  %v358_v17 = vmul.f32 %v2488_v6, %v348_v13 }
 0x231   :  { %v2989_v14 = vpop.eup %2988  ;;  %2696 = vmatpush3.bf16.msra.mxu1 %v2878_v53  ;;  %564 = vmatprep.mubr.bf16.mxu1 %v3317_v0 }
 0x232   :  { %2697 = vmatprep.subr.bf16.mxu1 %v2879_v12  ;;  %v349_v16 = vmul.f32 %v2989_v14, %v3526_v37 }
 0x234   :  { %v359_v18 = vmul.f32 %v2488_v6, %v349_v16  ;;  %v624_v6 = vlaneseq }
 0x235   :  { %2698 = vmatpush3.bf16.msra.mxu1 %v2879_v12 }
 0x236   :  { %2699 = vmatprep.subr.bf16.mxu1 %v2880_v15  ;;  %v361_v19 = vpack.c.bf16 %v359_v18, %v358_v17  ;;  %v3612_v7 = vshrl.u32 %v624_v6, 7  ;;  %v3614_v8 = vand.u32 127, %v624_v6 }
 0x238   :  { %565 = vmatmul.mubr.bf16.gmra.mrb[4].mxu1 %v361_v19  ;;  %v3617_v9 = vadd.s32 16, %v3612_v7  ;;  %v3620_v10 = vadd.s32 8, %v3612_v7  ;;  %vm631_vm2 = vcmp.le.s32.totalorder %v3614_v8, %v3612_v7 }
 0x239   :  { %2700 = vmatpush3.bf16.msra.mxu1 %v2880_v15  ;;  %2711 = vmatprep.mubr.bf16.mxu1 %v360_v11  ;;  %v3630_v15 = vadd.s32 24, %v3612_v7 }
 0x23a   :  { %2701 = vmatprep.subr.bf16.mxu1 %v2881_v20  ;;  %vm633_vm3 = vcmp.le.s32.totalorder %v3614_v8, %v3617_v9  ;;  %vm632_vm4 = vcmp.le.s32.totalorder %v3614_v8, %v3620_v10 }
 0x23b   :  { %vm634_vm5 = vcmp.le.s32.totalorder %v3614_v8, %v3630_v15 }
 0x23d   :  { %2702 = vmatpush3.bf16.msra.mxu1 %v2881_v20 }
 0x23e   :  { %2703 = vmatprep.subr.bf16.mxu1 %v2882_v21 }
 0x241   :  { %2704 = vmatpush3.bf16.msra.mxu1 %v2882_v21 }
 0x242   :  { %2705 = vmatprep.subr.bf16.mxu1 %v2883_v22 }
 0x245   :  { %2706 = vmatpush3.bf16.msra.mxu1 %v2883_v22 }
 0x246   :  { %2707 = vmatprep.subr.bf16.mxu1 %v2884_v23 }
 0x249   :  { %2708 = vmatpush3.bf16.msra.mxu1 %v2884_v23 }
 0x24a   :  { %2709 = vmatprep.subr.bf16.mxu1 %v2885_v25 }
 0x24d   :  { %2710 = vmatpush3.bf16.msra.mxu1 %v2885_v25 }
 0x250   :  { %2712 = vmatmul.mubr.bf16.vlgmr.msra.gmra.mrb[8].mxu1 %v361_v19 }
 0x303   :  { %v556_v26 = vpop.f32.mrb[0].mxu1 }
 0x304   :  { %v558_v28 = vpop.f32.mrb[1].mxu1 }
 0x305   :  { %v560_v29 = vpop.f32.mrb[2].mxu1 }
 0x306   :  { %v3540_v30 = vpack.c.bf16 %v560_v29, %v556_v26  ;;  %v562_v31 = vpop.f32.mrb[3].mxu1 }
 0x307   :  { %v3542_v32 = vpack.c.bf16 %v562_v31, %v558_v28 }
 0x308   :  { %2719 = vmatprep.mubr.msk.bf16.mxu0 %vm641_vm1, %v3540_v30 }
 0x309   :  { %818 = vrot.lane.b32.xlu0 %v3542_v32, %s3318_s8  ;;  %2799 = vmatprep.subr.msk.bf16.mxu0 %vm641_vm1, %v3542_v32  ;;  %v649_v33 = vsel %vm641_vm1, %v3542_v32, 0 }
 0x30a   :  { %2716 = vmatpush3.bf16.xpose.msra.mxu0 %v649_v33 }
 0x30b   :  { %v566_v35 = vpop.f32.mrb[4].mxu1 }
 0x30c   :  { %v568_v36 = vpop.f32.mrb[5].mxu1 }
 0x30d   :  { %v570_v38 = vpop.f32.mrb[6].mxu1 }
 0x30e   :  { %v3552_v39 = vpack.c.bf16 %v570_v38, %v566_v35  ;;  %v572_v40 = vpop.f32.mrb[7].mxu1 }
 0x30f   :  { %v3554_v41 = vpack.c.bf16 %v572_v40, %v568_v36 }
 0x310   :  { %814 = vrot.lane.b32.xlu0 %v3552_v39, %s3318_s8 }
 0x311   :  { %820 = vrot.lane.b32.xlu1 %v3554_v41, %s3318_s8  ;;  %2800 = vmatprep.subr.msk.bf16.mxu0 %vm641_vm1, %v3554_v41  ;;  %v652_v42 = vsel %vm641_vm1, %v3554_v41, 0 }
 0x312   :  { %2718 = vmatpush3.bf16.xpose.msra.mxu0 %v652_v42 }
 0x314   :  { %998 = vrot.lane.b32.xlu0 %v3540_v30, %s3307_s22 }
 0x315   :  { %812 = vrot.lane.b32.xlu1 %v3540_v30, %s3318_s8 }
 0x319   :  { %1002 = vrot.lane.b32.xlu1 %v3542_v32, %s3307_s22  ;;  %2720 = vmatmul.mubr.msk.bf16.vlgmr.msra.gmra.mrb[8].mxu0 %vm641_vm1, %v3552_v39 }
 0x31d   :  { %1004 = vrot.lane.b32.xlu1 %v3554_v41, %s3307_s22 }
 0x321   :  { %1000 = vrot.lane.b32.xlu1 %v3552_v39, %s3307_s22 }
 0x323   :  { %v2713_v43 = vpop.f32.mrb[8].mxu1 }
 0x324   :  { %v609_v44 = vpop.f32.mrb[9].mxu1 }
 0x325   :  { %v2714_v45 = vpop.f32.mrb[10].mxu1 }
 0x326   :  { %v3576_v46 = vpack.c.bf16 %v2714_v45, %v2713_v43  ;;  %v612_v47 = vpop.f32.mrb[11].mxu1 }
 0x327   :  { %v3578_v48 = vpack.c.bf16 %v612_v47, %v609_v44 }
 0x329   :  { %2723 = vmatprep.subr.bf16.mxu0 %v3578_v48 }
 0x32a   :  { %2724 = vmatpush3.bf16.msra.mxu0 %v3578_v48 }
 0x32b   :  { %2725 = vmatprep.subr.bf16.mxu0 %v3576_v46 }
 0x32e   :  { %2726 = vmatpush3.bf16.msra.mxu0 %v3576_v46 }
 0x37b   :  { %v819_v49 = vpop.permute.xlu0 %818 }
 0x37c   :  { %v829_v50 = vsel %vm641_vm1, %v819_v49, 0  ;;  %2801 = vmatprep.subr.msk.bf16.mxu1 %vm641_vm1, %v819_v49 }
 0x37d   :  { %2732 = vmatpush3.bf16.xpose.msra.mxu1 %v829_v50 }
 0x382   :  { %v815_v53 = vpop.permute.xlu0 %814 }
 0x383   :  { %v821_v51 = vpop.permute.xlu1 %820 }
 0x384   :  { %v832_v52 = vsel %vm641_vm1, %v821_v51, 0  ;;  %2802 = vmatprep.subr.msk.bf16.mxu1 %vm641_vm1, %v821_v51 }
 0x385   :  { %2734 = vmatpush3.bf16.xpose.msra.mxu1 %v832_v52 }
 0x386   :  { %v999_v56 = vpop.permute.xlu0 %998 }
 0x387   :  { %v813_v54 = vpop.permute.xlu1 %812 }
 0x388   :  { %2735 = vmatprep.mubr.msk.bf16.mxu1 %vm641_vm1, %v813_v54 }
 0x38b   :  { %v1003_v55 = vpop.permute.xlu1 %1002 }
 0x38c   :  { %v1013_v57 = vsel %vm641_vm1, %v1003_v55, 0  ;;  %2736 = vmatmul.mubr.msk.bf16.vlgmr.msra.gmra.mrb[12].mxu1 %vm641_vm1, %v815_v53  ;;  %2803 = vmatprep.subr.msk.bf16.mxu1 %vm641_vm1, %v1003_v55 }
 0x38d   :  { %2748 = vmatpush3.bf16.xpose.msra.mxu1 %v1013_v57  ;;  %2751 = vmatprep.mubr.msk.bf16.mxu1 %vm641_vm1, %v999_v56 }
 0x38f   :  { %v1005_v58 = vpop.permute.xlu1 %1004 }
 0x390   :  { %2804 = vmatprep.subr.msk.bf16.mxu1 %vm641_vm1, %v1005_v58  ;;  %v1016_v59 = vsel %vm641_vm1, %v1005_v58, 0 }
 0x393   :  { %v1001_v60 = vpop.permute.xlu1 %1000 }
 0x395   :  { %2750 = vmatpush3.bf16.xpose.msra.mxu1 %v1016_v59 }
 0x39c   :  { %2752 = vmatmul.mubr.msk.bf16.vlgmr.msra.gmra.mrb[16].mxu1 %vm641_vm1, %v1001_v60 }
 0x3ec   :  { %v3596_v61 = vpop.f32.mrb[8].mxu0 }
 0x3ed   :  { %v3598_v62 = vpop.f32.mrb[9].mxu0 }
 0x3ee   :  { %v3600_v63 = vpop.f32.mrb[10].mxu0  ;;  %v3672_v54 = vsel %vm631_vm2, %v3598_v62, -1e+30 }
 0x3ef   :  { %v3602_v1 = vpop.f32.mrb[11].mxu0 }
 0x3f0   :  { %v3694_v55 = vsel %vm632_vm4, %v3602_v1, -1e+30 }
 0x3f1   :  { %v710_v57 = vsel %vm641_vm1, %v3694_v55, -inf }
 0x45f   :  { %v3604_v2 = vpop.f32.mrb[12].mxu1 }
 0x460   :  { %v3606_v3 = vpop.f32.mrb[13].mxu1  ;;  %v3720_v62 = vsel %vm633_vm3, %v3604_v2, -1e+30 }
 0x461   :  { %v3608_v4 = vpop.f32.mrb[14].mxu1  ;;  %v3704_v58 = vsel %vm631_vm2, %v3606_v3, -1e+30  ;;  %v893_v1 = vsel %vm641_vm1, %v3720_v62, -inf }
 0x462   :  { %v3610_v5 = vpop.f32.mrb[15].mxu1  ;;  %v887_v60 = vsel %vm641_vm1, %v3704_v58, -inf }
 0x463   :  { %v3710_v59 = vsel %vm632_vm4, %v3610_v5, -1e+30 }
 0x46f   :  { %v2753_v11 = vpop.f32.mrb[16].mxu1 }
 0x470   :  { %v1052_v12 = vpop.f32.mrb[17].mxu1  ;;  %v1069_v18 = vsel %vm633_vm3, %v2753_v11, -1e+30 }
 0x471   :  { %v1067_v13 = vsel %vm631_vm2, %v1052_v12, -1e+30  ;;  %v2754_v14 = vpop.f32.mrb[18].mxu1  ;;  %v1077_v21 = vsel %vm641_vm1, %v1069_v18, -inf }
 0x472   :  { %v1055_v16 = vpop.f32.mrb[19].mxu1  ;;  %v1071_v17 = vsel %vm641_vm1, %v1067_v13, -inf  ;;  %v1070_v22 = vsel %vm634_vm5, %v2754_v14, -1e+30 }
 0x473   :  { %v1068_v19 = vsel %vm632_vm4, %v1055_v16, -1e+30  ;;  %1072 = vmax.xlane.f32.xlu0 %v1071_v17  ;;  %v1080_v23 = vsel %vm641_vm1, %v1070_v22, -inf }
 0x474   :  { %v1074_v20 = vsel %vm641_vm1, %v1068_v19, -inf }
 0x475   :  { %1075 = vmax.xlane.f32.xlu1 %v1074_v20 }
 0x477   :  { %1078 = vmax.xlane.f32.xlu0 %v1077_v21 }
 0x47b   :  { %1081 = vmax.xlane.f32.xlu0 %v1080_v23 }
 0x486   :  { %1119 = vrot.lane.b32.xlu1 %v3576_v46, %s3307_s22 }
 0x500   :  { %v1073_v25 = vpop.xlane.xlu0 %1072 }
 0x501   :  { %v1083_v26 = vsub.f32 %v1067_v13, %v1073_v25 }
 0x502   :  { %v1076_v28 = vpop.xlane.xlu1 %1075 }
 0x503   :  { %v1087_v33 = vmul.f32 1.442695, %v1083_v26  ;;  %v1084_v35 = vsub.f32 %v1068_v19, %v1076_v28 }
 0x504   :  { %v1079_v29 = vpop.xlane.xlu0 %1078 }
 0x505   :  { %v1085_v31 = vsub.f32 %v1069_v18, %v1079_v29  ;;  %v1089_v42 = vmul.f32 1.442695, %v1084_v35 }
 0x506   :  { %v1120_v5 = vpop.permute.xlu1 %1119 }
 0x507   :  { %v1091_v36 = vmul.f32 1.442695, %v1085_v31 }
 0x508   :  { %v1082_v38 = vpop.xlane.xlu0 %1081 }
 0x509   :  { %2990 = vpow2.f32 %v1091_v36  ;;  %v1086_v40 = vsub.f32 %v1070_v22, %v1082_v38 }
 0x50a   :  { %2992 = vpow2.f32 %v1087_v33 }
 0x50b   :  { %v1093_v43 = vmul.f32 1.442695, %v1086_v40 }
 0x50d   :  { %2994 = vpow2.f32 %v1093_v43 }
 0x50e   :  { %2996 = vpow2.f32 %v1089_v42 }
 0x513   :  { %v3651_v44 = vpop.eup %2990 }
 0x514   :  { %v1101_v45 = vsel %vm641_vm1, %v3651_v44, 0.0  ;;  %v2993_v47 = vpop.eup %2992 }
 0x515   :  { %1102 = vadd.xlane.f32.xlu0 %v1101_v45  ;;  %v1095_v50 = vsel %vm641_vm1, %v2993_v47, 0.0 }
 0x517   :  { %v2995_v49 = vpop.eup %2994 }
 0x518   :  { %v1104_v51 = vsel %vm641_vm1, %v2995_v49, 0.0  ;;  %v2997_v52 = vpop.eup %2996 }
 0x519   :  { %1096 = vadd.xlane.f32.xlu0 %v1095_v50  ;;  %1105 = vadd.xlane.f32.xlu1 %v1104_v51  ;;  %v1098_v53 = vsel %vm641_vm1, %v2997_v52, 0.0 }
 0x51d   :  { %1099 = vadd.xlane.f32.xlu1 %v1098_v53 }
 0x52e   :  { %1184 = vrot.lane.b32.xlu1 %v3542_v32, %s3319_s30  ;;  %v707_v32 = vsel %vm641_vm1, %v3672_v54, -inf }
 0x52f   :  { %1117 = vrot.lane.b32.xlu0 %v3578_v48, %s3307_s22 }
 0x532   :  { %1186 = vrot.lane.b32.xlu1 %v3554_v41, %s3319_s30  ;;  %v3680_v41 = vsel %vm633_vm3, %v3596_v61, -1e+30  ;;  %v890_v61 = vsel %vm641_vm1, %v3710_v59, -inf }
 0x533   :  { %1180 = vrot.lane.b32.xlu0 %v3540_v30, %s3319_s30  ;;  %v713_v30 = vsel %vm641_vm1, %v3680_v41, -inf }
 0x536   :  { %1182 = vrot.lane.b32.xlu1 %v3552_v39, %s3319_s30  ;;  %v3688_v39 = vsel %vm634_vm5, %v3600_v63, -1e+30  ;;  %v3726_v63 = vsel %vm634_vm5, %v3608_v4, -1e+30 }
 0x537   :  { %v716_v56 = vsel %vm641_vm1, %v3688_v39, -inf  ;;  %v896_v3 = vsel %vm641_vm1, %v3726_v63, -inf }
 0x552   :  { %708 = vmax.xlane.f32.xlu0 %v707_v32 }
 0x556   :  { %714 = vmax.xlane.f32.xlu0 %v713_v30 }
 0x55a   :  { %717 = vmax.xlane.f32.xlu0 %v716_v56  ;;  %711 = vmax.xlane.f32.xlu1 %v710_v57 }
 0x55e   :  { %888 = vmax.xlane.f32.xlu0 %v887_v60  ;;  %891 = vmax.xlane.f32.xlu1 %v890_v61 }
 0x562   :  { %894 = vmax.xlane.f32.xlu0 %v893_v1  ;;  %897 = vmax.xlane.f32.xlu1 %v896_v3 }
 0x5a2   :  { %v1103_v6 = vpop.xlane.xlu0 %1102 }
 0x5a6   :  { %v1097_v2 = vpop.xlane.xlu0 %1096  ;;  %v1106_v11 = vpop.xlane.xlu1 %1105 }
 0x5a7   :  { %2998 = vrcp.f32 %v1106_v11 }
 0x5a8   :  { %3000 = vrcp.f32 %v1097_v2 }
 0x5a9   :  { %3002 = vrcp.f32 %v1103_v6 }
 0x5aa   :  { %v1100_v12 = vpop.xlane.xlu1 %1099  ;;  %v1118_v4 = vpop.permute.xlu0 %1117 }
 0x5ab   :  { %3004 = vrcp.f32 %v1100_v12  ;;  %2755 = vmatprep.subr.bf16.mxu1 %v1118_v4 }
 0x5ac   :  { %2756 = vmatpush3.bf16.msra.mxu1 %v1118_v4 }
 0x5ad   :  { %2757 = vmatprep.subr.bf16.mxu1 %v1120_v5 }
 0x5ae   :  { %v1185_v13 = vpop.permute.xlu1 %1184  ;;  %v1181_v28 = vpop.permute.xlu0 %1180 }
 0x5af   :  { %v1195_v26 = vsel %vm641_vm1, %v1185_v13, 0 }
 0x5b0   :  { %2758 = vmatpush3.bf16.msra.mxu1 %v1120_v5 }
 0x5b1   :  { %2805 = vmatprep.subr.msk.bf16.mxu1 %vm641_vm1, %v1185_v13  ;;  %v2999_v14 = vpop.eup %2998 }
 0x5b2   :  { %v3001_v16 = vpop.eup %3000  ;;  %v1114_v19 = vmul.f32 %v2999_v14, %v2995_v49  ;;  %v1187_v29 = vpop.permute.xlu1 %1186 }
 0x5b3   :  { %v3003_v17 = vpop.eup %3002  ;;  %v1111_v20 = vmul.f32 %v3001_v16, %v2993_v47  ;;  %v1198_v31 = vsel %vm641_vm1, %v1187_v29, 0 }
 0x5b4   :  { %v1113_v22 = vmul.f32 %v3003_v17, %v3651_v44 }
 0x5b5   :  { %v3005_v18 = vpop.eup %3004 }
 0x5b6   :  { %v1112_v21 = vmul.f32 %v3005_v18, %v2997_v52  ;;  %v1116_v25 = vpack.c.bf16 %v1114_v19, %v1113_v22  ;;  %v1183_v33 = vpop.permute.xlu1 %1182 }
 0x5b8   :  { %v1115_v23 = vpack.c.bf16 %v1112_v21, %v1111_v20 }
 0x5ba   :  { %2759 = vmatprep.mubr.msk.bf16.mxu1 %vm641_vm1, %v1115_v23 }
 0x5bb   :  { %2760 = vmatmul.mubr.msk.bf16.vlgmr.msra.gmra.mrb[20].mxu1 %vm641_vm1, %v1116_v25 }
 0x5bc   :  { %2764 = vmatpush3.bf16.xpose.msra.mxu1 %v1195_v26  ;;  %2767 = vmatprep.mubr.msk.bf16.mxu1 %vm641_vm1, %v1181_v28 }
 0x5bd   :  { %2806 = vmatprep.subr.msk.bf16.mxu1 %vm641_vm1, %v1187_v29 }
 0x5c4   :  { %2766 = vmatpush3.bf16.xpose.msra.mxu1 %v1198_v31 }
 0x5cb   :  { %2768 = vmatmul.mubr.msk.bf16.vlgmr.msra.gmra.mrb[24].mxu1 %vm641_vm1, %v1183_v33 }
 0x5cc   :  { %1779 = vmatprep.mubr.bf16.mxu1 %v3317_v0 }
 0x5df   :  { %v709_v35 = vpop.xlane.xlu0 %708 }
 0x5e0   :  { %v719_v50 = vsub.f32 %v3672_v54, %v709_v35 }
 0x5e2   :  { %v723_v53 = vmul.f32 1.442695, %v719_v50 }
 0x5e3   :  { %v715_v36 = vpop.xlane.xlu0 %714 }
 0x5e4   :  { %v721_v32 = vsub.f32 %v3680_v41, %v715_v36  ;;  %3006 = vpow2.f32 %v723_v53 }
 0x5e6   :  { %v727_v60 = vmul.f32 1.442695, %v721_v32 }
 0x5e7   :  { %v718_v43 = vpop.xlane.xlu0 %717  ;;  %v712_v49 = vpop.xlane.xlu1 %711 }
 0x5e8   :  { %v720_v51 = vsub.f32 %v3694_v55, %v712_v49  ;;  %v722_v30 = vsub.f32 %v3688_v39, %v718_v43 }
 0x5ea   :  { %v725_v57 = vmul.f32 1.442695, %v720_v51  ;;  %v729_v1 = vmul.f32 1.442695, %v722_v30 }
 0x5eb   :  { %v889_v52 = vpop.xlane.xlu0 %888  ;;  %v892_v56 = vpop.xlane.xlu1 %891 }
 0x5ec   :  { %v899_v61 = vsub.f32 %v3704_v58, %v889_v52  ;;  %3008 = vpow2.f32 %v725_v57  ;;  %v900_v5 = vsub.f32 %v3710_v59, %v892_v56 }
 0x5ed   :  { %3010 = vpow2.f32 %v727_v60 }
 0x5ee   :  { %v903_v2 = vmul.f32 1.442695, %v899_v61  ;;  %3012 = vpow2.f32 %v729_v1  ;;  %v905_v4 = vmul.f32 1.442695, %v900_v5  ;;  %v3777_v17 = vpop.eup %3006 }
 0x5ef   :  { %v895_v3 = vpop.xlane.xlu0 %894  ;;  %v898_v6 = vpop.xlane.xlu1 %897  ;;  %v731_v19 = vsel %vm641_vm1, %v3777_v17, 0.0 }
 0x5f0   :  { %v901_v41 = vsub.f32 %v3720_v62, %v895_v3  ;;  %v902_v13 = vsub.f32 %v3726_v63, %v898_v6  ;;  %3014 = vpow2.f32 %v903_v2 }
 0x5f1   :  { %3016 = vpow2.f32 %v905_v4 }
 0x5f2   :  { %v907_v14 = vmul.f32 1.442695, %v901_v41  ;;  %v909_v9 = vmul.f32 1.442695, %v902_v13 }
 0x5f4   :  { %3018 = vpow2.f32 %v907_v14 }
 0x5f5   :  { %3020 = vpow2.f32 %v909_v9 }
 0x5f6   :  { %v3780_v18 = vpop.eup %3008 }
 0x5f7   :  { %v3784_v20 = vpop.eup %3010  ;;  %v734_v21 = vsel %vm641_vm1, %v3780_v18, 0.0 }
 0x5f8   :  { %v3786_v15 = vpop.eup %3012  ;;  %v737_v22 = vsel %vm641_vm1, %v3784_v20, 0.0 }
 0x5f9   :  { %v740_v25 = vsel %vm641_vm1, %v3786_v15, 0.0 }
 0x5fa   :  { %v3792_v23 = vpop.eup %3014 }
 0x5fb   :  { %v3796_v26 = vpop.eup %3016  ;;  %v911_v28 = vsel %vm641_vm1, %v3792_v23, 0.0 }
 0x5fc   :  { %v914_v31 = vsel %vm641_vm1, %v3796_v26, 0.0 }
 0x5fe   :  { %v3800_v29 = vpop.eup %3018 }
 0x5ff   :  { %v3804_v33 = vpop.eup %3020  ;;  %v917_v35 = vsel %vm641_vm1, %v3800_v29, 0.0 }
 0x600   :  { %v920_v36 = vsel %vm641_vm1, %v3804_v33, 0.0 }
 0x68e   :  { %v3742_v38 = vpop.f32.mrb[20].mxu1 }
 0x68f   :  { %v3744_v40 = vpop.f32.mrb[21].mxu1 }
 0x690   :  { %v3746_v42 = vpop.f32.mrb[22].mxu1 }
 0x691   :  { %v1179_v44 = vpack.c.bf16 %v3746_v42, %v3742_v38  ;;  %v3750_v45 = vpop.f32.mrb[23].mxu1 }
 0x692   :  { %v1178_v47 = vpack.c.bf16 %v3750_v45, %v3744_v40 }
 0x69e   :  { %v2769_v54 = vpop.f32.mrb[24].mxu1 }
 0x69f   :  { %v1234_v55 = vpop.f32.mrb[25].mxu1  ;;  %v1251_v59 = vsel %vm633_vm3, %v2769_v54, -1e+30 }
 0x6a0   :  { %v1249_v39 = vsel %vm631_vm2, %v1234_v55, -1e+30  ;;  %v2770_v11 = vpop.f32.mrb[26].mxu1  ;;  %v1259_v63 = vsel %vm641_vm1, %v1251_v59, -inf }
 0x6a1   :  { %v1237_v12 = vpop.f32.mrb[27].mxu1  ;;  %v1253_v58 = vsel %vm641_vm1, %v1249_v39, -inf  ;;  %v1252_v16 = vsel %vm634_vm5, %v2770_v11, -1e+30 }
 0x6a2   :  { %v1250_v62 = vsel %vm632_vm4, %v1237_v12, -1e+30  ;;  %1254 = vmax.xlane.f32.xlu0 %v1253_v58  ;;  %v1262_v10 = vsel %vm641_vm1, %v1252_v16, -inf }
 0x6a3   :  { %v1256_v7 = vsel %vm641_vm1, %v1250_v62, -inf }
 0x6a4   :  { %1257 = vmax.xlane.f32.xlu1 %v1256_v7 }
 0x6a6   :  { %1260 = vmax.xlane.f32.xlu0 %v1259_v63 }
 0x6a8   :  { %1263 = vmax.xlane.f32.xlu1 %v1262_v10 }
 0x6aa   :  { %732 = vadd.xlane.f32.xlu0 %v731_v19 }
 0x6ac   :  { %735 = vadd.xlane.f32.xlu1 %v734_v21 }
 0x6ae   :  { %738 = vadd.xlane.f32.xlu0 %v737_v22 }
 0x6b0   :  { %741 = vadd.xlane.f32.xlu1 %v740_v25 }
 0x6b2   :  { %912 = vadd.xlane.f32.xlu0 %v911_v28 }
 0x6b4   :  { %915 = vadd.xlane.f32.xlu1 %v914_v31 }
 0x6b6   :  { %918 = vadd.xlane.f32.xlu0 %v917_v35 }
 0x6b8   :  { %921 = vadd.xlane.f32.xlu1 %v920_v36 }
 0x6c9   :  { %937 = vrot.lane.b32.xlu1 %v3576_v46, %s3318_s8 }
 0x6cd   :  { %1299 = vrot.lane.b32.xlu1 %v3578_v48, %s3319_s30 }
 0x72f   :  { %v1255_v43 = vpop.xlane.xlu0 %1254 }
 0x730   :  { %v1265_v49 = vsub.f32 %v1249_v39, %v1255_v43 }
 0x731   :  { %v1258_v50 = vpop.xlane.xlu1 %1257 }
 0x732   :  { %v1269_v51 = vmul.f32 1.442695, %v1265_v49  ;;  %v1266_v52 = vsub.f32 %v1250_v62, %v1258_v50 }
 0x733   :  { %v1261_v53 = vpop.xlane.xlu0 %1260 }
 0x734   :  { %v1271_v32 = vmul.f32 1.442695, %v1266_v52  ;;  %v1267_v30 = vsub.f32 %v1251_v59, %v1261_v53  ;;  %3022 = vpow2.f32 %v1269_v51 }
 0x735   :  { %v1264_v56 = vpop.xlane.xlu1 %1263 }
 0x736   :  { %v1273_v57 = vmul.f32 1.442695, %v1267_v30  ;;  %v1268_v60 = vsub.f32 %v1252_v16, %v1264_v56  ;;  %3024 = vpow2.f32 %v1271_v32 }
 0x737   :  { %v733_v61 = vpop.xlane.xlu0 %732 }
 0x738   :  { %3026 = vpow2.f32 %v1273_v57  ;;  %v1275_v1 = vmul.f32 1.442695, %v1268_v60 }
 0x739   :  { %3028 = vrcp.f32 %v733_v61  ;;  %v736_v3 = vpop.xlane.xlu1 %735 }
 0x73a   :  { %3030 = vpow2.f32 %v1275_v1 }
 0x73b   :  { %3032 = vrcp.f32 %v736_v3  ;;  %v739_v5 = vpop.xlane.xlu0 %738 }
 0x73c   :  { %3034 = vrcp.f32 %v739_v5 }
 0x73d   :  { %v742_v54 = vpop.xlane.xlu1 %741 }
 0x73e   :  { %3036 = vrcp.f32 %v742_v54  ;;  %v3814_v55 = vpop.eup %3022 }
 0x73f   :  { %v913_v6 = vpop.xlane.xlu0 %912  ;;  %v1277_v14 = vsel %vm641_vm1, %v3814_v55, 0.0 }
 0x740   :  { %3038 = vrcp.f32 %v913_v6  ;;  %v3816_v2 = vpop.eup %3024 }
 0x741   :  { %v916_v41 = vpop.xlane.xlu1 %915  ;;  %v1280_v19 = vsel %vm641_vm1, %v3816_v2, 0.0 }
 0x742   :  { %v3818_v39 = vpop.eup %3026  ;;  %3040 = vrcp.f32 %v916_v41 }
 0x743   :  { %v3029_v11 = vpop.eup %3028  ;;  %v1283_v12 = vsel %vm641_vm1, %v3818_v39, 0.0  ;;  %v919_v31 = vpop.xlane.xlu0 %918 }
 0x744   :  { %v3031_v58 = vpop.eup %3030  ;;  %1284 = vadd.xlane.f32.xlu0 %v1283_v12  ;;  %v747_v62 = vmul.f32 %v3029_v11, %v3777_v17 }
 0x745   :  { %v3033_v4 = vpop.eup %3032  ;;  %v1286_v13 = vsel %vm641_vm1, %v3031_v58, 0.0 }
 0x746   :  { %v3035_v59 = vpop.eup %3034  ;;  %1287 = vadd.xlane.f32.xlu1 %v1286_v13  ;;  %v748_v7 = vmul.f32 %v3033_v4, %v3780_v18  ;;  %v2887_v4 = vld [vmem:[#allocation8 + $0x8] sm:$0xff]  }
 0x747   :  { %v749_v9 = vmul.f32 %v3035_v59, %v3784_v20  ;;  %v922_v20 = vpop.xlane.xlu1 %921  ;;  %v2891_v13 = vld [vmem:[#allocation8 + $0x28] sm:$0xff]   ;;  %v2892_v59 = vld [vmem:[#allocation8 + $0x30] sm:$0xff]  }
 0x748   :  { %v3037_v16 = vpop.eup %3036  ;;  %1278 = vadd.xlane.f32.xlu0 %v1277_v14  ;;  %v751_v63 = vpack.c.bf16 %v748_v7, %v747_v62  ;;  %3042 = vrcp.f32 %v922_v20  ;;  %v2893_v62 = vld [vmem:[#allocation8 + $0x38] sm:$0xff]  }
 0x749   :  { %v750_v10 = vmul.f32 %v3037_v16, %v3786_v15  ;;  %3044 = vrcp.f32 %v919_v31 }
 0x74a   :  { %v3039_v21 = vpop.eup %3038  ;;  %2727 = vmatprep.mubr.msk.bf16.mxu0 %vm641_vm1, %v751_v63  ;;  %1281 = vadd.xlane.f32.xlu1 %v1280_v19 }
 0x74b   :  { %v752_v17 = vpack.c.bf16 %v750_v10, %v749_v9  ;;  %v927_v18 = vmul.f32 %v3039_v21, %v3792_v23  ;;  %v938_v15 = vpop.permute.xlu1 %937 }
 0x74c   :  { %v3041_v22 = vpop.eup %3040 }
 0x74d   :  { %2728 = vmatmul.mubr.msk.bf16.vlgmr.msra.gmra.mrb[12].mxu0 %vm641_vm1, %v752_v17  ;;  %v928_v25 = vmul.f32 %v3041_v22, %v3796_v26 }
 0x74f   :  { %v931_v28 = vpack.c.bf16 %v928_v25, %v927_v18  ;;  %v1300_v35 = vpop.permute.xlu1 %1299 }
 0x751   :  { %2743 = vmatprep.mubr.msk.bf16.mxu0 %vm641_vm1, %v931_v28 }
 0x752   :  { %v3043_v49 = vpop.eup %3042 }
 0x75b   :  { %1301 = vrot.lane.b32.xlu1 %v3576_v46, %s3319_s30  ;;  %v3045_v46 = vpop.eup %3044 }
 0x75c   :  { %v929_v51 = vmul.f32 %v3045_v46, %v3800_v29  ;;  %v2905_v46 = vld [vmem:[#allocation10 + $0x2c] ss:$16 sps:$4 sm:$0xff]  }
 0x75e   :  { %935 = vrot.lane.b32.xlu0 %v3578_v48, %s3318_s8  ;;  %v930_v48 = vmul.f32 %v3043_v49, %v3804_v33  ;;  %v2899_v49 = vld [vmem:[#allocation10 + $0xc] ss:$16 sps:$4 sm:$0xff]  }
 0x760   :  { %v932_v53 = vpack.c.bf16 %v930_v48, %v929_v51  ;;  %v2900_v48 = vld [vmem:[#allocation10 + $0x20] ss:$16 sps:$4 sm:$0xff]   ;;  %v2903_v51 = vld [vmem:[#allocation10 + $0x28] ss:$16 sps:$4 sm:$0xff]  }
 0x7d1   :  { %v1285_v36 = vpop.xlane.xlu0 %1284 }
 0x7d3   :  { %v1288_v43 = vpop.xlane.xlu1 %1287 }
 0x7d5   :  { %v1279_v23 = vpop.xlane.xlu0 %1278 }
 0x7d6   :  { %3046 = vrcp.f32 %v1279_v23  ;;  %v2896_v23 = vld [vmem:[#allocation10 + $0x4] ss:$16 sps:$4 sm:$0xff]  }
 0x7d7   :  { %3048 = vrcp.f32 %v1288_v43  ;;  %v1282_v26 = vpop.xlane.xlu1 %1281  ;;  %v2894_v43 = vld [vmem:[#allocation10] ss:$16 sps:$4 sm:$0xff]   ;;  %1747 = vmatprep.subr.bf16.mxu1 %v2896_v23 }
 0x7d8   :  { %3050 = vrcp.f32 %v1282_v26  ;;  %v2897_v26 = vld [vmem:[#allocation10 + $0x8] ss:$16 sps:$4 sm:$0xff]   ;;  %1748 = vmatpush1.bf16.msra.mxu1 %v2894_v43 }
 0x7d9   :  { %3052 = vrcp.f32 %v1285_v36  ;;  %v936_v50 = vpop.permute.xlu0 %935 }
 0x7da   :  { %2739 = vmatprep.subr.bf16.mxu0 %v936_v50 }
 0x7db   :  { %2740 = vmatpush3.bf16.msra.mxu0 %v936_v50  ;;  %v1302_v57 = vpop.permute.xlu1 %1301  ;;  %v2902_v50 = vld [vmem:[#allocation10 + $0x24] ss:$16 sps:$4 sm:$0xff]  }
 0x7dc   :  { %2741 = vmatprep.subr.bf16.mxu0 %v938_v15  ;;  %1749 = vmatprep.subr.bf16.mxu1 %v2902_v50 }
 0x7dd   :  { %1750 = vmatpush1.bf16.msra.mxu1 %v2900_v48 }
 0x7df   :  { %2742 = vmatpush3.bf16.msra.mxu0 %v938_v15 }
 0x7e0   :  { %v3047_v52 = vpop.eup %3046  ;;  %2771 = vmatprep.subr.bf16.mxu0 %v1300_v35 }
 0x7e1   :  { %v3049_v32 = vpop.eup %3048  ;;  %v1293_v60 = vmul.f32 %v3047_v52, %v3814_v55  ;;  %v2886_v55 = vld [vmem:[#allocation8] sm:$0xff]  }
 0x7e2   :  { %v3051_v30 = vpop.eup %3050  ;;  %2744 = vmatmul.mubr.msk.bf16.vlgmr.msra.gmra.mrb[16].mxu0 %vm641_vm1, %v932_v53  ;;  %v1296_v1 = vmul.f32 %v3049_v32, %v3031_v58  ;;  %v2890_v58 = vld [vmem:[#allocation8 + $0x20] sm:$0xff]   ;;  %v2911_v53 = vld [vmem:[#allocation10 + $0x4c] ss:$16 sps:$4 sm:$0xff]  }
 0x7e3   :  { %v3053_v56 = vpop.eup %3052  ;;  %2772 = vmatpush3.bf16.msra.mxu0 %v1300_v35  ;;  %v1294_v61 = vmul.f32 %v3051_v30, %v3816_v2  ;;  %v2888_v2 = vld [vmem:[#allocation8 + $0x10] sm:$0xff]   ;;  %v2909_v30 = vld [vmem:[#allocation10 + $0x48] ss:$16 sps:$4 sm:$0xff]  }
 0x7e4   :  { %2773 = vmatprep.subr.bf16.mxu0 %v1302_v57  ;;  %v1295_v29 = vmul.f32 %v3053_v56, %v3818_v39  ;;  %v2889_v39 = vld [vmem:[#allocation8 + $0x18] sm:$0xff]   ;;  %v2908_v52 = vld [vmem:[#allocation10 + $0x44] ss:$16 sps:$4 sm:$0xff]   ;;  %v2906_v32 = vld [vmem:[#allocation10 + $0x40] ss:$16 sps:$4 sm:$0xff]  }
 0x7e5   :  { %v1297_v33 = vpack.c.bf16 %v1294_v61, %v1293_v60  ;;  %1751 = vmatprep.subr.bf16.mxu1 %v2908_v52 }
 0x7e6   :  { %v1298_v3 = vpack.c.bf16 %v1296_v1, %v1295_v29  ;;  %1752 = vmatpush1.bf16.msra.mxu1 %v2906_v32  ;;  %v2943_v32 = vld [vmem:[#allocation11] sm:$0xff]  }
 0x7e7   :  { %2774 = vmatpush3.bf16.msra.mxu0 %v1302_v57  ;;  %2775 = vmatprep.mubr.msk.bf16.mxu0 %vm641_vm1, %v1297_v33 }
 0x7e8   :  { %2779 = vmatprep.subr.bf16.mxu0 %v2886_v55 }
 0x7ea   :  { %2776 = vmatmul.mubr.msk.bf16.vlgmr.msra.gmra.mrb[20].mxu0 %vm641_vm1, %v1298_v3 }
 0x7eb   :  { %2780 = vmatpush3.bf16.msra.mxu0 %v2886_v55  ;;  %v2918_v55 = vld [vmem:[#allocation10 + $0x80] ss:$16 sps:$4 sm:$0xff]  }
 0x7ec   :  { %2781 = vmatprep.subr.bf16.mxu0 %v2887_v4 }
 0x7ef   :  { %2782 = vmatpush3.bf16.msra.mxu0 %v2887_v4  ;;  %v2921_v4 = vld [vmem:[#allocation10 + $0x88] ss:$16 sps:$4 sm:$0xff]  }
 0x7f0   :  { %2783 = vmatprep.subr.bf16.mxu0 %v2888_v2 }
 0x7f3   :  { %2784 = vmatpush3.bf16.msra.mxu0 %v2888_v2  ;;  %v2926_v2 = vld [vmem:[#allocation10 + $0xa4] ss:$16 sps:$4 sm:$0xff]  }
 0x7f4   :  { %2785 = vmatprep.subr.bf16.mxu0 %v2889_v39 }
 0x7f7   :  { %2786 = vmatpush3.bf16.msra.mxu0 %v2889_v39  ;;  %v2929_v39 = vld [vmem:[#allocation10 + $0xac] ss:$16 sps:$4 sm:$0xff]  }
 0x7f8   :  { %2787 = vmatprep.subr.bf16.mxu0 %v2890_v58 }
 0x7fb   :  { %2788 = vmatpush3.bf16.msra.mxu0 %v2890_v58  ;;  %v2924_v58 = vld [vmem:[#allocation10 + $0xa0] ss:$16 sps:$4 sm:$0xff]  }
 0x7fc   :  { %2789 = vmatprep.subr.bf16.mxu0 %v2891_v13 }
 0x7ff   :  { %2790 = vmatpush3.bf16.msra.mxu0 %v2891_v13  ;;  %v2927_v13 = vld [vmem:[#allocation10 + $0xa8] ss:$16 sps:$4 sm:$0xff]  }
 0x800   :  { %2791 = vmatprep.subr.bf16.mxu0 %v2892_v59 }
 0x803   :  { %2792 = vmatpush3.bf16.msra.mxu0 %v2892_v59  ;;  %v2932_v59 = vld [vmem:[#allocation10 + $0xc4] ss:$16 sps:$4 sm:$0xff]  }
 0x804   :  { %2793 = vmatprep.subr.bf16.mxu0 %v2893_v62 }
 0x807   :  { %2794 = vmatpush3.bf16.msra.mxu0 %v2893_v62  ;;  %v2930_v62 = vld [vmem:[#allocation10 + $0xc0] ss:$16 sps:$4 sm:$0xff]  }
 0x808   :  { %1800 = vmatprep.subr.bf16.mxu0 %v2899_v49 }
 0x820   :  { %v2729_v5 = vpop.f32.mrb[12].mxu0 }
 0x821   :  { %v793_v54 = vpop.f32.mrb[13].mxu0 }
 0x822   :  { %v2730_v6 = vpop.f32.mrb[14].mxu0 }
 0x823   :  { %v809_v41 = vpack.c.bf16 %v2730_v6, %v2729_v5  ;;  %v796_v11 = vpop.f32.mrb[15].mxu0  ;;  %v2917_v6 = vld [vmem:[#allocation10 + $0x6c] ss:$16 sps:$4 sm:$0xff]  }
 0x824   :  { %v808_v12 = vpack.c.bf16 %v796_v11, %v793_v54  ;;  %v2915_v11 = vld [vmem:[#allocation10 + $0x68] ss:$16 sps:$4 sm:$0xff]  }
 0x8b5   :  { %v2745_v7 = vpop.f32.mrb[16].mxu0 }
 0x8b6   :  { %v981_v14 = vpop.f32.mrb[17].mxu0 }
 0x8b7   :  { %v2746_v16 = vpop.f32.mrb[18].mxu0 }
 0x8b8   :  { %v997_v63 = vpack.c.bf16 %v2746_v16, %v2745_v7  ;;  %v984_v9 = vpop.f32.mrb[19].mxu0  ;;  %v2933_v7 = vld [vmem:[#allocation10 + $0xc8] ss:$16 sps:$4 sm:$0xff]   ;;  %v2938_v16 = vld [vmem:[#allocation10 + $0xe4] ss:$16 sps:$4 sm:$0xff]  }
 0x8b9   :  { %v996_v10 = vpack.c.bf16 %v984_v9, %v981_v14  ;;  %v2935_v14 = vld [vmem:[#allocation10 + $0xcc] ss:$16 sps:$4 sm:$0xff]   ;;  %v2936_v9 = vld [vmem:[#allocation10 + $0xe0] ss:$16 sps:$4 sm:$0xff]  }
 0x8ba   :  { %1366 = vrot.lane.b32.xlu1 %v997_v63, %s3319_s30  ;;  %v2941_v63 = vld [vmem:[#allocation10 + $0xec] ss:$16 sps:$4 sm:$0xff]  }
 0x8bb   :  { %1364 = vrot.lane.b32.xlu0 %v996_v10, %s3319_s30  ;;  %v2939_v10 = vld [vmem:[#allocation10 + $0xe8] ss:$16 sps:$4 sm:$0xff]  }
 0x8bd   :  { %v2777_v19 = vpop.f32.mrb[20].mxu0 }
 0x8be   :  { %1372 = vrot.lane.b32.xlu1 %v1179_v44, %s3307_s22  ;;  %v1345_v21 = vpop.f32.mrb[21].mxu0 }
 0x8bf   :  { %1370 = vrot.lane.b32.xlu0 %v1178_v47, %s3307_s22  ;;  %v2778_v17 = vpop.f32.mrb[22].mxu0 }
 0x8c0   :  { %v1361_v22 = vpack.c.bf16 %v2778_v17, %v2777_v19  ;;  %v1348_v18 = vpop.f32.mrb[23].mxu0 }
 0x8c1   :  { %v1360_v25 = vpack.c.bf16 %v1348_v18, %v1345_v21 }
 0x8c2   :  { %1378 = vrot.lane.b32.xlu1 %v1361_v22, %s3318_s8 }
 0x8c3   :  { %1376 = vrot.lane.b32.xlu0 %v1360_v25, %s3318_s8 }
 0x92c   :  { %v1367_v28 = vpop.permute.xlu1 %1366 }
 0x92d   :  { %v1365_v20 = vpop.permute.xlu0 %1364  ;;  %v1385_v44 = vsel %vm641_vm1, %v809_v41, %v1367_v28  ;;  %v2912_v41 = vld [vmem:[#allocation10 + $0x60] ss:$16 sps:$4 sm:$0xff]  }
 0x92e   :  { %v1382_v38 = vsel %vm641_vm1, %v808_v12, %v1365_v20  ;;  %v2920_v12 = vld [vmem:[#allocation10 + $0x84] ss:$16 sps:$4 sm:$0xff]   ;;  %vm2413_vm1 = vcmask 7168  }
 0x930   :  { %v1373_v15 = vpop.permute.xlu1 %1372 }
 0x931   :  { %v1371_v31 = vpop.permute.xlu0 %1370  ;;  %v1389_v47 = vsel %vm256_vm0, %v1385_v44, %v1373_v15 }
 0x932   :  { %v1387_v40 = vsel %vm256_vm0, %v1382_v38, %v1371_v31 }
 0x934   :  { %v1379_v42 = vpop.permute.xlu1 %1378 }
 0x935   :  { %v1377_v45 = vpop.permute.xlu0 %1376  ;;  %v1395_v36 = vsel %vm1390_vm6, %v1389_v47, %v1379_v42  ;;  %v2537_v47 = vld [vmem:[%s3973_s9] ss:$0 sm:$0xff] }
 0x936   :  { %v1392_v35 = vsel %vm1390_vm6, %v1387_v40, %v1377_v45 }
 0x937   :  { %2795 = vmatprep.mubr.bf16.mxu0 %v1392_v35 }
 0x938   :  { %2796 = vmatmul.mubr.bf16.vlgmr.msra.gmra.mrb[24].mxu0 %v1395_v36 }
 0x939   :  { %1832 = vmatprep.mubr.bf16.mxu0 %v3317_v0  ;;  %1801 = vmatpush1.bf16.msra.mxu0 %v2897_v26 }
 0x93a   :  { %1802 = vmatprep.subr.bf16.mxu0 %v2905_v46 }
 0x93d   :  { %1803 = vmatpush1.bf16.msra.mxu0 %v2903_v51 }
 0x93e   :  { %1804 = vmatprep.subr.bf16.mxu0 %v2911_v53  ;;  %v2942_v53 = vld [vmem:[#allocation11 + $0x40] sm:$0xff]  }
 0x941   :  { %1805 = vmatpush1.bf16.msra.mxu0 %v2909_v30  ;;  %v2944_v30 = vld [vmem:[#allocation11 + $0x48] sm:$0xff]  }
 0x942   :  { %1806 = vmatprep.subr.bf16.mxu0 %v2917_v6  ;;  %v2954_v6 = vld [vmem:[#allocation11 + $0x70] sm:$0xff]  }
 0x945   :  { %1807 = vmatpush1.bf16.msra.mxu0 %v2915_v11  ;;  %v2956_v11 = vld [vmem:[#allocation11 + $0x78] sm:$0xff]  }
 0xa0b   :  { %v2797_v56 = vpop.f32.mrb[24].mxu0 }
 0xa0c   :  { %v1495_v57 = vpop.f32.mrb[25].mxu0  ;;  %v3869_v33 = vadd.f32 %v2797_v56, %v3524_v34  ;;  %v2945_v56 = vld [vmem:[#allocation11 + $0x8] sm:$0xff]  }
 0xa0d   :  { %v3866_v60 = vadd.f32 %v1495_v57, %v3516_v24  ;;  %v2798_v61 = vpop.f32.mrb[26].mxu0  ;;  %v2946_v57 = vld [vmem:[#allocation11 + $0x50] sm:$0xff]  }
 0xa0e   :  { %v1498_v1 = vpop.f32.mrb[27].mxu0  ;;  %v3879_v54 = vadd.f32 %v2798_v61, %v3526_v37  ;;  %v1517_v24 = vmul.f32 %v3869_v33, %v3869_v33  ;;  %v2923_v37 = vld [vmem:[#allocation10 + $0x8c] ss:$16 sps:$4 sm:$0xff]   ;;  %v2947_v61 = vld [vmem:[#allocation11 + $0x10] sm:$0xff]  }
 0xa0f   :  { %v3872_v29 = vadd.f32 %v1498_v1, %v3518_v27  ;;  %v1515_v3 = vmul.f32 %v3866_v60, %v3866_v60  ;;  %v2914_v27 = vld [vmem:[#allocation10 + $0x64] ss:$16 sps:$4 sm:$0xff]   ;;  %1808 = vmatprep.subr.bf16.mxu0 %v2923_v37  ;;  %v2948_v1 = vld [vmem:[#allocation11 + $0x58] sm:$0xff]  }
 0xa10   :  { %v1518_v34 = vmul.f32 %v3879_v54, %v3879_v54  ;;  %1753 = vmatprep.subr.bf16.mxu1 %v2914_v27  ;;  %1809 = vmatpush1.bf16.msra.mxu0 %v2921_v4  ;;  %v2953_v27 = vld [vmem:[#allocation11 + $0x28] sm:$0xff]  }
 0xa11   :  { %1519 = vadd.xlane.f32.xlu0 %v1515_v3  ;;  %v1516_v5 = vmul.f32 %v3872_v29, %v3872_v29  ;;  %1754 = vmatpush1.bf16.msra.mxu1 %v2912_v41  ;;  %v2949_v3 = vld [vmem:[#allocation11 + $0x18] sm:$0xff]   ;;  %v2955_v41 = vld [vmem:[#allocation11 + $0x30] sm:$0xff]  }
 0xa12   :  { %1755 = vmatprep.subr.bf16.mxu1 %v2920_v12  ;;  %1810 = vmatprep.subr.bf16.mxu0 %v2929_v39  ;;  %v2957_v12 = vld [vmem:[#allocation11 + $0x38] sm:$0xff]  }
 0xa13   :  { %1521 = vadd.xlane.f32.xlu1 %v1516_v5  ;;  %v2950_v5 = vld [vmem:[#allocation11 + $0x60] sm:$0xff]  }
 0xa14   :  { %1811 = vmatpush1.bf16.msra.mxu0 %v2927_v13 }
 0xa15   :  { %1523 = vadd.xlane.f32.xlu0 %v1517_v24  ;;  %1756 = vmatpush1.bf16.msra.mxu1 %v2918_v55  ;;  %v2951_v24 = vld [vmem:[#allocation11 + $0x20] sm:$0xff]  }
 0xa16   :  { %1757 = vmatprep.subr.bf16.mxu1 %v2926_v2  ;;  %1812 = vmatprep.subr.bf16.mxu0 %v2935_v14 }
 0xa18   :  { %1813 = vmatpush1.bf16.msra.mxu0 %v2933_v7 }
 0xa19   :  { %1525 = vadd.xlane.f32.xlu0 %v1518_v34  ;;  %1758 = vmatpush1.bf16.msra.mxu1 %v2924_v58  ;;  %v2952_v34 = vld [vmem:[#allocation11 + $0x68] sm:$0xff]  }
 0xa1a   :  { %1759 = vmatprep.subr.bf16.mxu1 %v2932_v59  ;;  %1814 = vmatprep.subr.bf16.mxu0 %v2941_v63 }
 0xa1c   :  { %1815 = vmatpush1.bf16.msra.mxu0 %v2939_v10 }
 0xa1d   :  { %1760 = vmatpush1.bf16.msra.mxu1 %v2930_v62 }
 0xa1e   :  { %1761 = vmatprep.subr.bf16.mxu1 %v2938_v16 }
 0xa21   :  { %1762 = vmatpush1.bf16.msra.mxu1 %v2936_v9 }
 0xa22   :  { %2667 = vmatprep.subr.bf16.mxu1 %v2942_v53 }
 0xa9e   :  { %v1520_v19 = vpop.xlane.xlu0 %1519 }
 0xa9f   :  { %v1527_v21 = vmul.f32 0.0078125, %v1520_v19 }
 0xaa0   :  { %v1522_v17 = vpop.xlane.xlu1 %1521 }
 0xaa1   :  { %v1531_v22 = vadd.f32 1e-06, %v1527_v21  ;;  %v1528_v18 = vmul.f32 0.0078125, %v1522_v17 }
 0xaa2   :  { %v1524_v25 = vpop.xlane.xlu0 %1523 }
 0xaa3   :  { %3054 = vrsqrt.f32 %v1531_v22  ;;  %v1532_v28 = vadd.f32 1e-06, %v1528_v18  ;;  %v1529_v20 = vmul.f32 0.0078125, %v1524_v25 }
 0xaa5   :  { %3056 = vrsqrt.f32 %v1532_v28  ;;  %v1533_v15 = vadd.f32 1e-06, %v1529_v20 }
 0xaa6   :  { %v1526_v31 = vpop.xlane.xlu0 %1525 }
 0xaa7   :  { %v1530_v38 = vmul.f32 0.0078125, %v1526_v31  ;;  %3058 = vrsqrt.f32 %v1533_v15 }
 0xaa9   :  { %v1534_v42 = vadd.f32 1e-06, %v1530_v38 }
 0xaab   :  { %3060 = vrsqrt.f32 %v1534_v42 }
 0xaad   :  { %v3055_v44 = vpop.eup %3054 }
 0xaae   :  { %v1539_v40 = vmul.f32 %v3055_v44, %v3866_v60 }
 0xaaf   :  { %v3057_v45 = vpop.eup %3056 }
 0xab0   :  { %v1540_v35 = vmul.f32 %v3057_v45, %v3872_v29  ;;  %v1549_v36 = vmul.f32 %v2537_v47, %v1539_v40 }
 0xab1   :  { %v3059_v23 = vpop.eup %3058 }
 0xab2   :  { %v1550_v43 = vmul.f32 %v2537_v47, %v1540_v35  ;;  %v1541_v50 = vmul.f32 %v3059_v23, %v3869_v33 }
 0xab4   :  { %v1553_v26 = vpack.c.bf16 %v1550_v43, %v1549_v36  ;;  %v1551_v51 = vmul.f32 %v2537_v47, %v1541_v50 }
 0xab5   :  { %v3061_v49 = vpop.eup %3060 }
 0xab6   :  { %1780 = vmatmul.mubr.bf16.vlgmr.msra.gmra.mrb[28].mxu1 %v1553_v26  ;;  %1833 = vmatmul.mubr.bf16.vlgmr.msra.gmra.mrb[28].mxu0 %v1553_v26  ;;  %v1542_v46 = vmul.f32 %v3061_v49, %v3879_v54 }
 0xab7   :  { %1789 = vmatprep.mubr.bf16.mxu1 %v3317_v0  ;;  %1842 = vmatprep.mubr.bf16.mxu0 %v3317_v0 }
 0xab8   :  { %v1552_v48 = vmul.f32 %v2537_v47, %v1542_v46  ;;  %2668 = vmatpush3.bf16.msra.mxu1 %v2943_v32 }
 0xab9   :  { %2669 = vmatprep.subr.bf16.mxu1 %v2944_v30 }
 0xaba   :  { %v1554_v52 = vpack.c.bf16 %v1552_v48, %v1551_v51 }
 0xabc   :  { %2670 = vmatpush3.bf16.msra.mxu1 %v2945_v56 }
 0xabd   :  { %2671 = vmatprep.subr.bf16.mxu1 %v2946_v57 }
 0xabe   :  { %1790 = vmatmul.mubr.bf16.gmra.mrb[32].mxu1 %v1554_v52  ;;  %1843 = vmatmul.mubr.bf16.gmra.mrb[32].mxu0 %v1554_v52 }
 0xabf   :  { %2271 = vmatprep.mubr.bf16.mxu0 %v3317_v0 }
 0xac0   :  { %2672 = vmatpush3.bf16.msra.mxu1 %v2947_v61 }
 0xac1   :  { %2673 = vmatprep.subr.bf16.mxu1 %v2948_v1 }
 0xac4   :  { %2674 = vmatpush3.bf16.msra.mxu1 %v2949_v3 }
 0xac5   :  { %2675 = vmatprep.subr.bf16.mxu1 %v2950_v5 }
 0xac8   :  { %2676 = vmatpush3.bf16.msra.mxu1 %v2951_v24 }
 0xac9   :  { %2677 = vmatprep.subr.bf16.mxu1 %v2952_v34 }
 0xacc   :  { %2678 = vmatpush3.bf16.msra.mxu1 %v2953_v27 }
 0xacd   :  { %2679 = vmatprep.subr.bf16.mxu1 %v2954_v6 }
 0xad0   :  { %2680 = vmatpush3.bf16.msra.mxu1 %v2955_v41 }
 0xad1   :  { %2681 = vmatprep.subr.bf16.mxu1 %v2956_v11 }
 0xad4   :  { %2682 = vmatpush3.bf16.msra.mxu1 %v2957_v12 }
 0xb89   :  { %v1781_v37 = vpop.f32.mrb[28].mxu1  ;;  %v1834_v55 = vpop.f32.mrb[28].mxu0 }
 0xb8a   :  { %v2570_v4 = vmul.f32 -1.442695, %v1781_v37  ;;  %v1783_v2 = vpop.f32.mrb[29].mxu1  ;;  %v1836_v39 = vpop.f32.mrb[29].mxu0 }
 0xb8b   :  { %v2571_v58 = vmul.f32 -1.442695, %v1783_v2  ;;  %v1785_v13 = vpop.f32.mrb[30].mxu1  ;;  %v1838_v59 = vpop.f32.mrb[30].mxu0 }
 0xb8c   :  { %3062 = vpow2.f32 %v2570_v4  ;;  %v2572_v62 = vmul.f32 -1.442695, %v1785_v13  ;;  %v1787_v7 = vpop.f32.mrb[31].mxu1  ;;  %v1840_v14 = vpop.f32.mrb[31].mxu0 }
 0xb8d   :  { %3064 = vpow2.f32 %v2571_v58  ;;  %v2573_v16 = vmul.f32 -1.442695, %v1787_v7 }
 0xb8e   :  { %3066 = vpow2.f32 %v2572_v62 }
 0xb8f   :  { %3068 = vpow2.f32 %v2573_v16 }
 0xb91   :  { %v1791_v63 = vpop.f32.mrb[32].mxu1  ;;  %v1844_v9 = vpop.f32.mrb[32].mxu0 }
 0xb92   :  { %v2574_v10 = vmul.f32 -1.442695, %v1791_v63  ;;  %v1793_v19 = vpop.f32.mrb[33].mxu1  ;;  %v1846_v21 = vpop.f32.mrb[33].mxu0 }
 0xb93   :  { %v2575_v17 = vmul.f32 -1.442695, %v1793_v19  ;;  %v1795_v22 = vpop.f32.mrb[34].mxu1  ;;  %v1848_v18 = vpop.f32.mrb[34].mxu0 }
 0xb94   :  { %3070 = vpow2.f32 %v2574_v10  ;;  %v2576_v25 = vmul.f32 -1.442695, %v1795_v22  ;;  %v1797_v28 = vpop.f32.mrb[35].mxu1  ;;  %v1850_v20 = vpop.f32.mrb[35].mxu0  ;;  %v2963_v10 = vld [vmem:[#allocation13 + $0x14] ss:$8 sps:$4 sm:$0xff]  }
 0xb95   :  { %3072 = vpow2.f32 %v2575_v17  ;;  %v2577_v15 = vmul.f32 -1.442695, %v1797_v28 }
 0xb96   :  { %v3063_v31 = vpop.eup %3062  ;;  %3074 = vpow2.f32 %v2576_v25 }
 0xb97   :  { %v3065_v38 = vpop.eup %3064  ;;  %v1877_v42 = vadd.f32 1.0, %v3063_v31  ;;  %3076 = vpow2.f32 %v2577_v15 }
 0xb98   :  { %v3067_v44 = vpop.eup %3066  ;;  %v1878_v40 = vadd.f32 1.0, %v3065_v38 }
 0xb99   :  { %v3069_v45 = vpop.eup %3068  ;;  %3078 = vrcp.f32 %v1877_v42  ;;  %v1879_v47 = vadd.f32 1.0, %v3067_v44 }
 0xb9a   :  { %3080 = vrcp.f32 %v1878_v40  ;;  %v1880_v35 = vadd.f32 1.0, %v3069_v45 }
 0xb9b   :  { %3082 = vrcp.f32 %v1879_v47 }
 0xb9c   :  { %3084 = vrcp.f32 %v1880_v35 }
 0xb9e   :  { %v3071_v36 = vpop.eup %3070 }
 0xb9f   :  { %v3073_v43 = vpop.eup %3072  ;;  %v1881_v23 = vadd.f32 1.0, %v3071_v36 }
 0xba0   :  { %v3075_v26 = vpop.eup %3074  ;;  %v1882_v49 = vadd.f32 1.0, %v3073_v43 }
 0xba1   :  { %v3077_v50 = vpop.eup %3076  ;;  %3086 = vrcp.f32 %v1881_v23  ;;  %v1883_v46 = vadd.f32 1.0, %v3075_v26  ;;  %v2969_v26 = vld [vmem:[#allocation13 + $0x34] ss:$8 sps:$4 sm:$0xff]  }
 0xba2   :  { %3088 = vrcp.f32 %v1882_v49  ;;  %v1884_v48 = vadd.f32 1.0, %v3077_v50  ;;  %v2972_v49 = vld [vmem:[#allocation13 + $0x44] ss:$8 sps:$4 sm:$0xff]   ;;  %v2970_v50 = vld [vmem:[#allocation13 + $0x40] ss:$8 sps:$4 sm:$0xff]  }
 0xba3   :  { %v3079_v51 = vpop.eup %3078  ;;  %3090 = vrcp.f32 %v1883_v46  ;;  %v2975_v46 = vld [vmem:[#allocation13 + $0x54] ss:$8 sps:$4 sm:$0xff]  }
 0xba4   :  { %v3081_v52 = vpop.eup %3080  ;;  %v1901_v53 = vmul.f32 %v3079_v51, %v1781_v37  ;;  %3092 = vrcp.f32 %v1884_v48  ;;  %v2973_v48 = vld [vmem:[#allocation13 + $0x50] ss:$8 sps:$4 sm:$0xff]   ;;  %v2976_v51 = vld [vmem:[#allocation13 + $0x60] ss:$8 sps:$4 sm:$0xff]  }
 0xba5   :  { %v3083_v32 = vpop.eup %3082  ;;  %v1902_v30 = vmul.f32 %v3081_v52, %v1783_v2  ;;  %v2981_v52 = vld [vmem:[#allocation13 + $0x74] ss:$8 sps:$4 sm:$0xff]  }
 0xba6   :  { %v3085_v56 = vpop.eup %3084  ;;  %v1909_v57 = vmul.f32 %v1901_v53, %v1834_v55  ;;  %v1903_v61 = vmul.f32 %v3083_v32, %v1785_v13 }
 0xba7   :  { %v1910_v1 = vmul.f32 %v1902_v30, %v1836_v39  ;;  %v1904_v3 = vmul.f32 %v3085_v56, %v1787_v7 }
 0xba8   :  { %v1911_v5 = vmul.f32 %v1903_v61, %v1838_v59  ;;  %v2958_v59 = vld [vmem:[#allocation13] ss:$8 sps:$4 sm:$0xff]  }
 0xba9   :  { %v1912_v24 = vmul.f32 %v1904_v3, %v1840_v14  ;;  %v2960_v14 = vld [vmem:[#allocation13 + $0x4] ss:$8 sps:$4 sm:$0xff]  }
 0xbaa   :  { %v1917_v34 = vpack.c.bf16 %v1911_v5, %v1909_v57  ;;  %2239 = vmatprep.subr.bf16.mxu0 %v2960_v14 }
 0xbab   :  { %v3087_v27 = vpop.eup %3086  ;;  %v1918_v6 = vpack.c.bf16 %v1912_v24, %v1910_v1  ;;  %2240 = vmatpush1.bf16.msra.mxu0 %v2958_v59 }
 0xbac   :  { %v3089_v41 = vpop.eup %3088  ;;  %v1905_v11 = vmul.f32 %v3087_v27, %v1791_v63  ;;  %v2961_v63 = vld [vmem:[#allocation13 + $0x10] ss:$8 sps:$4 sm:$0xff]   ;;  %2241 = vmatprep.subr.bf16.mxu0 %v2963_v10 }
 0xbad   :  { %v3091_v12 = vpop.eup %3090  ;;  %v1906_v4 = vmul.f32 %v3089_v41, %v1793_v19  ;;  %2081 = vmatprep.mubr.bf16.mxu1 %v1918_v6  ;;  %v2966_v19 = vld [vmem:[#allocation13 + $0x24] ss:$8 sps:$4 sm:$0xff]  }
 0xbae   :  { %v3093_v58 = vpop.eup %3092  ;;  %v1913_v37 = vmul.f32 %v1905_v11, %v1844_v9  ;;  %v1907_v62 = vmul.f32 %v3091_v12, %v1795_v22  ;;  %2082 = vmatmul.mubr.bf16.vlgmr.msra.gmra.mrb[36].mxu1 %v1917_v34  ;;  %v2964_v9 = vld [vmem:[#allocation13 + $0x20] ss:$8 sps:$4 sm:$0xff]  }
 0xbaf   :  { %v1914_v2 = vmul.f32 %v1906_v4, %v1846_v21  ;;  %v1908_v16 = vmul.f32 %v3093_v58, %v1797_v28  ;;  %2242 = vmatpush1.bf16.msra.mxu0 %v2961_v63  ;;  %v2594_v12 = vld [vmem:[%s3974_s10] ss:$0 sm:$0xff] }
 0xbb0   :  { %v1915_v55 = vmul.f32 %v1907_v62, %v1848_v18  ;;  %2243 = vmatprep.subr.bf16.mxu0 %v2966_v19 }
 0xbb1   :  { %v1916_v13 = vmul.f32 %v1908_v16, %v1850_v20 }
 0xbb2   :  { %v1919_v39 = vpack.c.bf16 %v1915_v55, %v1913_v37 }
 0xbb3   :  { %v1920_v7 = vpack.c.bf16 %v1916_v13, %v1914_v2  ;;  %2244 = vmatpush1.bf16.msra.mxu0 %v2964_v9 }
 0xbb4   :  { %2245 = vmatprep.subr.bf16.mxu0 %v2969_v26 }
 0xbb5   :  { %2089 = vmatprep.mubr.bf16.mxu1 %v1920_v7 }
 0xbb6   :  { %2090 = vmatmul.mubr.bf16.gmra.mrb[40].mxu1 %v1919_v39 }
 0xc81   :  { %v2683_v21 = vpop.f32.mrb[36].mxu1 }
 0xc82   :  { %v2684_v17 = vpop.f32.mrb[37].mxu1 }
 0xc83   :  { %v2685_v22 = vadd.f32 %v2684_v17, %v2683_v21  ;;  %v2686_v18 = vpop.f32.mrb[38].mxu1 }
 0xc84   :  { %v2687_v25 = vpop.f32.mrb[39].mxu1 }
 0xc85   :  { %v2098_v28 = vadd.f32 %v2685_v22, %v3866_v60  ;;  %v2688_v20 = vadd.f32 %v2687_v25, %v2686_v18 }
 0xc87   :  { %v2099_v15 = vadd.f32 %v2688_v20, %v3872_v29  ;;  %v2103_v31 = vmul.f32 %v2098_v28, %v2098_v28  ;;  %v2967_v29 = vld [vmem:[#allocation13 + $0x30] ss:$8 sps:$4 sm:$0xff]   ;;  %v3912_v20 = vld [vmem:[%s3975_s11 + $0x8] sm:$0xff] }
 0xc88   :  { %2246 = vmatpush1.bf16.msra.mxu0 %v2967_v29  ;;  %vm2394_vm0 = vcmp.ne.s32.totalorder %v3912_v20, 4294967096 }
 0xc89   :  { %2107 = vadd.xlane.f32.xlu0 %v2103_v31  ;;  %v2689_v38 = vpop.f32.mrb[40].mxu1  ;;  %v2104_v42 = vmul.f32 %v2099_v15, %v2099_v15  ;;  %2247 = vmatprep.subr.bf16.mxu0 %v2972_v49  ;;  %v3924_v31 = vld [vmem:[%s3975_s11] sm:$0xff] }
 0xc8a   :  { %v2690_v44 = vpop.f32.mrb[41].mxu1  ;;  %vm2393_vm15 = vcmp.ne.s32.totalorder %v3924_v31, 4294967096 }
 0xc8b   :  { %v2691_v40 = vadd.f32 %v2690_v44, %v2689_v38  ;;  %2109 = vadd.xlane.f32.xlu1 %v2104_v42  ;;  %v2692_v45 = vpop.f32.mrb[42].mxu1  ;;  %v3930_v38 = vld [vmem:[%s3975_s11 + $0x18] sm:$0xff] }
 0xc8c   :  { %v2693_v47 = vpop.f32.mrb[43].mxu1  ;;  %2248 = vmatpush1.bf16.msra.mxu0 %v2970_v50  ;;  %vm2396_vm3 = vcmp.ne.s32.totalorder %v3930_v38, 4294967096 }
 0xc8d   :  { %v2100_v35 = vadd.f32 %v2691_v40, %v3869_v33  ;;  %v2694_v36 = vadd.f32 %v2693_v47, %v2692_v45  ;;  %2249 = vmatprep.subr.bf16.mxu0 %v2975_v46  ;;  %v2978_v33 = vld [vmem:[#allocation13 + $0x64] ss:$8 sps:$4 sm:$0xff]   ;;  %v2352_v47 = vadd.s32 128, %v3614_v8 }
 0xc8f   :  { %v2101_v43 = vadd.f32 %v2694_v36, %v3879_v54  ;;  %v2105_v23 = vmul.f32 %v2100_v35, %v2100_v35  ;;  %v2979_v54 = vld [vmem:[#allocation13 + $0x70] ss:$8 sps:$4 sm:$0xff]  }
 0xc90   :  { %2250 = vmatpush1.bf16.msra.mxu0 %v2973_v48 }
 0xc91   :  { %2111 = vadd.xlane.f32.xlu0 %v2105_v23  ;;  %v2106_v60 = vmul.f32 %v2101_v43, %v2101_v43  ;;  %2251 = vmatprep.subr.bf16.mxu0 %v2978_v33 }
 0xc93   :  { %2113 = vadd.xlane.f32.xlu1 %v2106_v60 }
 0xc94   :  { %2252 = vmatpush1.bf16.msra.mxu0 %v2976_v51 }
 0xc95   :  { %2253 = vmatprep.subr.bf16.mxu0 %v2981_v52 }
 0xc98   :  { %2254 = vmatpush1.bf16.msra.mxu0 %v2979_v54 }
 0xd16   :  { %v2108_v53 = vpop.xlane.xlu0 %2107 }
 0xd17   :  { %v2115_v32 = vmul.f32 0.0078125, %v2108_v53 }
 0xd18   :  { %v2110_v30 = vpop.xlane.xlu1 %2109 }
 0xd19   :  { %v2119_v56 = vadd.f32 1e-06, %v2115_v32  ;;  %v2116_v57 = vmul.f32 0.0078125, %v2110_v30 }
 0xd1b   :  { %3094 = vrsqrt.f32 %v2119_v56  ;;  %v2120_v61 = vadd.f32 1e-06, %v2116_v57 }
 0xd1d   :  { %3096 = vrsqrt.f32 %v2120_v61 }
 0xd1e   :  { %v2112_v1 = vpop.xlane.xlu0 %2111 }
 0xd1f   :  { %v2117_v3 = vmul.f32 0.0078125, %v2112_v1 }
 0xd20   :  { %v2114_v5 = vpop.xlane.xlu1 %2113 }
 0xd21   :  { %v2121_v24 = vadd.f32 1e-06, %v2117_v3  ;;  %v2118_v34 = vmul.f32 0.0078125, %v2114_v5 }
 0xd23   :  { %3098 = vrsqrt.f32 %v2121_v24  ;;  %v2122_v27 = vadd.f32 1e-06, %v2118_v34 }
 0xd25   :  { %v3095_v6 = vpop.eup %3094  ;;  %3100 = vrsqrt.f32 %v2122_v27 }
 0xd26   :  { %v2127_v41 = vmul.f32 %v3095_v6, %v2098_v28 }
 0xd27   :  { %v3097_v11 = vpop.eup %3096 }
 0xd28   :  { %v2128_v4 = vmul.f32 %v3097_v11, %v2099_v15  ;;  %v2137_v58 = vmul.f32 %v2594_v12, %v2127_v41  ;;  %v3918_v15 = vld [vmem:[%s3975_s11 + $0x10] sm:$0xff] }
 0xd29   :  { %vm2395_vm2 = vcmp.ne.s32.totalorder %v3918_v15, 4294967096 }
 0xd2a   :  { %v2138_v37 = vmul.f32 %v2594_v12, %v2128_v4 }
 0xd2c   :  { %v2141_v62 = vpack.c.bf16 %v2138_v37, %v2137_v58 }
 0xd2d   :  { %v3099_v2 = vpop.eup %3098 }
 0xd2e   :  { %2272 = vmatmul.mubr.bf16.vlgmr.msra.gmra.mrb[36].mxu0 %v2141_v62  ;;  %v2129_v16 = vmul.f32 %v3099_v2, %v2100_v35 }
 0xd2f   :  { %v3101_v55 = vpop.eup %3100  ;;  %2281 = vmatprep.mubr.bf16.mxu0 %v3317_v0 }
 0xd30   :  { %v2130_v13 = vmul.f32 %v3101_v55, %v2101_v43  ;;  %v2139_v39 = vmul.f32 %v2594_v12, %v2129_v16 }
 0xd32   :  { %v2140_v7 = vmul.f32 %v2594_v12, %v2130_v13 }
 0xd34   :  { %v2142_v59 = vpack.c.bf16 %v2140_v7, %v2139_v39 }
 0xd36   :  { %2282 = vmatmul.mubr.bf16.gmra.mrb[40].mxu0 %v2142_v59 }
 0xe01   :  { %v2273_v14 = vpop.f32.mrb[36].mxu0 }
 0xe02   :  { %v2275_v10 = vpop.f32.mrb[37].mxu0 }
 0xe03   :  { %v2277_v63 = vpop.f32.mrb[38].mxu0  ;;  %v2296_v19 = vmax.f32 %v2273_v14, %v2275_v10 }
 0xe04   :  { %v2279_v9 = vpop.f32.mrb[39].mxu0 }
 0xe05   :  { %2297 = vmax.xlane.f32.xlu0 %v2296_v19  ;;  %v2299_v21 = vmax.f32 %v2277_v63, %v2279_v9 }
 0xe07   :  { %2300 = vmax.xlane.f32.xlu1 %v2299_v21 }
 0xe09   :  { %v2283_v17 = vpop.f32.mrb[40].mxu0 }
 0xe0a   :  { %v2285_v22 = vpop.f32.mrb[41].mxu0 }
 0xe0b   :  { %v3903_v18 = vpop.f32.mrb[42].mxu0  ;;  %v2302_v25 = vmax.f32 %v2283_v17, %v2285_v22 }
 0xe0c   :  { %v3905_v28 = vpop.f32.mrb[43].mxu0 }
 0xe0d   :  { %v2305_v0 = vmax.f32 %v3903_v18, %v3905_v28  ;;  %2303 = vmax.xlane.f32.xlu0 %v2302_v25 }
 0xe18   :  { %2357 = vperm.xlu1 %2835, %v3912_v20  }
 0xe1c   :  { %2360 = vperm.xlu1 %2835, %v3918_v15  }
 0xe23   :  { %2354 = vperm.xlu0 %2834, %v3924_v31  }
 0xe40   :  { %2306 = vmax.xlane.f32.xlu1 %v2305_v0 }
 0xe51   :  { %2363 = vperm.xlu1 %2835, %v3930_v38  }
 0xe92   :  { %v2298_v42 = vpop.xlane.xlu0 %2297 }
 0xe93   :  { %v2308_v44 = vsub.f32 %v2273_v14, %v2298_v42  ;;  %v2309_v40 = vsub.f32 %v2275_v10, %v2298_v42 }
 0xe94   :  { %v2301_v45 = vpop.xlane.xlu1 %2300 }
 0xe95   :  { %v2316_v35 = vmul.f32 1.442695, %v2308_v44  ;;  %v2318_v36 = vmul.f32 1.442695, %v2309_v40  ;;  %v2310_v43 = vsub.f32 %v2277_v63, %v2301_v45  ;;  %v2311_v23 = vsub.f32 %v2279_v9, %v2301_v45 }
 0xe96   :  { %v3320_v63 = vmov 0.0  }
 0xe97   :  { %3102 = vpow2.f32 %v2316_v35  ;;  %v2320_v60 = vmul.f32 1.442695, %v2310_v43  ;;  %v2322_v26 = vmul.f32 1.442695, %v2311_v23  ;;  %v2611_v19 = vsel %vm2393_vm15, 1.0, %v3320_v63 }
 0xe98   :  { %3104 = vpow2.f32 %v2318_v36  ;;  %v2358_v29 = vpop.permute.xlu1 %2357  ;;  %v2612_v9 = vsel %vm2394_vm0, 1.0, %v3320_v63  ;;  %v2614_v25 = vsel %vm2396_vm3, 1.0, %v3320_v63 }
 0xe99   :  { %3106 = vpow2.f32 %v2320_v60  ;;  %vm2367_vm7 = vcmp.eq.s32.totalorder %v3614_v8, %v2358_v29  ;;  %vm2368_vm8 = vcmp.eq.s32.totalorder %v2352_v47, %v2358_v29  ;;  %v2431_v21 = vsel %vm2413_vm1, %v2612_v9, 0.0 }
 0xe9a   :  { %3108 = vpow2.f32 %v2322_v26  ;;  %v2304_v49 = vpop.xlane.xlu0 %2303  ;;  %v2375_v50 = vsel %vm2367_vm7, %v2310_v43, 0.0  ;;  %v2376_v46 = vsel %vm2368_vm8, %v2311_v23, 0.0  ;;  %v2435_v0 = vsel %vm2413_vm1, %v2614_v25, 0.0 }
 0xe9b   :  { %v2312_v48 = vsub.f32 %v2283_v17, %v2304_v49  ;;  %v2313_v33 = vsub.f32 %v2285_v22, %v2304_v49  ;;  %v2384_v51 = vadd.f32 %v2376_v46, %v2375_v50  ;;  %v2613_v17 = vsel %vm2395_vm2, 1.0, %v3320_v63 }
 0xe9c   :  { %v2361_v54 = vpop.permute.xlu1 %2360 }
 0xe9d   :  { %v2324_v52 = vmul.f32 1.442695, %v2312_v48  ;;  %v2326_v53 = vmul.f32 1.442695, %v2313_v33  ;;  %vm2369_vm9 = vcmp.eq.s32.totalorder %v3614_v8, %v2361_v54  ;;  %vm2370_vm10 = vcmp.eq.s32.totalorder %v2352_v47, %v2361_v54 }
 0xe9e   :  { %v2377_v32 = vsel %vm2369_vm9, %v2312_v48, 0.0  ;;  %v2378_v30 = vsel %vm2370_vm10, %v2313_v33, 0.0 }
 0xe9f   :  { %3110 = vpow2.f32 %v2324_v52  ;;  %v2387_v56 = vadd.f32 %v2378_v30, %v2377_v32 }
 0xea0   :  { %3112 = vpow2.f32 %v2326_v53 }
 0xea1   :  { %v3103_v57 = vpop.eup %3102 }
 0xea2   :  { %v3105_v61 = vpop.eup %3104  ;;  %v2355_v1 = vpop.permute.xlu0 %2354 }
 0xea3   :  { %v3107_v3 = vpop.eup %3106  ;;  %vm2365_vm11 = vcmp.eq.s32.totalorder %v3614_v8, %v2355_v1  ;;  %vm2366_vm12 = vcmp.eq.s32.totalorder %v2352_v47, %v2355_v1  ;;  %v2332_v5 = vadd.f32 %v3105_v61, %v3103_v57 }
 0xea4   :  { %v3109_v24 = vpop.eup %3108  ;;  %v2373_v34 = vsel %vm2365_vm11, %v2308_v44, 0.0  ;;  %v2374_v27 = vsel %vm2366_vm12, %v2309_v40, 0.0 }
 0xea5   :  { %2333 = vadd.xlane.f32.xlu1 %v2332_v5  ;;  %v2335_v6 = vadd.f32 %v3109_v24, %v3107_v3  ;;  %v2381_v41 = vadd.f32 %v2374_v27, %v2373_v34 }
 0xea7   :  { %2336 = vadd.xlane.f32.xlu0 %v2335_v6 }
 0xea9   :  { %v3111_v11 = vpop.eup %3110 }
 0xeaa   :  { %v3113_v12 = vpop.eup %3112 }
 0xeab   :  { %2388 = vadd.xlane.f32.xlu0 %v2387_v56  ;;  %v2338_v4 = vadd.f32 %v3113_v12, %v3111_v11 }
 0xead   :  { %2339 = vadd.xlane.f32.xlu1 %v2338_v4 }
 0xecd   :  { %v2307_v58 = vpop.xlane.xlu1 %2306 }
 0xece   :  { %v2314_v37 = vsub.f32 %v3903_v18, %v2307_v58  ;;  %v2315_v62 = vsub.f32 %v3905_v28, %v2307_v58  ;;  %v2433_v18 = vsel %vm2413_vm1, %v2613_v17, 0.0 }
 0xed0   :  { %v2328_v2 = vmul.f32 1.442695, %v2314_v37  ;;  %v2330_v16 = vmul.f32 1.442695, %v2315_v62 }
 0xed1   :  { %v2364_v55 = vpop.permute.xlu1 %2363 }
 0xed2   :  { %3114 = vpow2.f32 %v2328_v2  ;;  %vm2371_vm13 = vcmp.eq.s32.totalorder %v3614_v8, %v2364_v55  ;;  %vm2372_vm14 = vcmp.eq.s32.totalorder %v2352_v47, %v2364_v55  ;;  %v2430_v8 = vsel %vm2413_vm1, %v2611_v19, 0.0 }
 0xed3   :  { %3116 = vpow2.f32 %v2330_v16  ;;  %v2379_v13 = vsel %vm2371_vm13, %v2314_v37, 0.0  ;;  %v2380_v39 = vsel %vm2372_vm14, %v2315_v62, 0.0  ;;  %v2432_v22 = vadd.f32 %v2431_v21, %v2430_v8 }
 0xed4   :  { %v2390_v7 = vadd.f32 %v2380_v39, %v2379_v13 }
 0xed5   :  { %v2434_v28 = vadd.f32 %v2433_v18, %v2432_v22 }
 0xed7   :  { %v2436_v31 = vadd.f32 %v2435_v0, %v2434_v28 }
 0xedc   :  { %v3115_v59 = vpop.eup %3114 }
 0xedd   :  { %v3117_v14 = vpop.eup %3116 }
 0xede   :  { %v2341_v10 = vadd.f32 %v3117_v14, %v3115_v59 }
 0xee0   :  { %2342 = vadd.xlane.f32.xlu1 %v2341_v10 }
 0xee4   :  { %2382 = vadd.xlane.f32.xlu1 %v2381_v41 }
 0xee8   :  { %2385 = vadd.xlane.f32.xlu1 %v2384_v51 }
 0xeec   :  { %2391 = vadd.xlane.f32.xlu1 %v2390_v7 }
 0xef0   :  { %2437 = vadd.xlane.f32.xlu1 %v2436_v31 }
 0xf32   :  { %v2334_v20 = vpop.xlane.xlu1 %2333 }
 0xf33   :  { %3118 = vlog2.f32 %v2334_v20 }
 0xf34   :  { %v2337_v15 = vpop.xlane.xlu0 %2336 }
 0xf38   :  { %v2389_v23 = vpop.xlane.xlu0 %2388 }
 0xf3a   :  { %v2340_v42 = vpop.xlane.xlu1 %2339 }
 0xf3b   :  { %3120 = vlog2.f32 %v2340_v42 }
 0xf3c   :  { %3122 = vlog2.f32 %v2337_v15 }
 0xf3d   :  { %v3119_v44 = vpop.eup %3118 }
 0xf3e   :  { %v2345_v47 = vmul.f32 0.6931472, %v3119_v44 }
 0xf45   :  { %v3121_v38 = vpop.eup %3120 }
 0xf46   :  { %v2349_v45 = vmul.f32 0.6931472, %v3121_v38  ;;  %v3123_v35 = vpop.eup %3122 }
 0xf47   :  { %v2347_v26 = vmul.f32 0.6931472, %v3123_v35 }
 0xf48   :  { %v2407_v60 = vsub.f32 %v2349_v45, %v2389_v23 }
 0xf4a   :  { %v2411_v33 = vmul.f32 %v2613_v17, %v2407_v60 }
 0xf4c   :  { %v2417_v56 = vsel %vm2413_vm1, %v2411_v33, 0.0 }
 0xf6d   :  { %v2343_v40 = vpop.xlane.xlu1 %2342 }
 0xf6e   :  { %3124 = vlog2.f32 %v2343_v40 }
 0xf71   :  { %v2383_v36 = vpop.xlane.xlu1 %2382 }
 0xf72   :  { %v2405_v43 = vsub.f32 %v2345_v47, %v2383_v36 }
 0xf74   :  { %v2409_v49 = vmul.f32 %v2611_v19, %v2405_v43 }
 0xf75   :  { %v2386_v29 = vpop.xlane.xlu1 %2385 }
 0xf76   :  { %v2406_v50 = vsub.f32 %v2347_v26, %v2386_v29  ;;  %v2414_v52 = vsel %vm2413_vm1, %v2409_v49, 0.0 }
 0xf78   :  { %v3125_v46 = vpop.eup %3124  ;;  %v2410_v48 = vmul.f32 %v2612_v9, %v2406_v50 }
 0xf79   :  { %v2351_v51 = vmul.f32 0.6931472, %v3125_v46  ;;  %v2392_v54 = vpop.xlane.xlu1 %2391 }
 0xf7a   :  { %v2415_v53 = vsel %vm2413_vm1, %v2410_v48, 0.0 }
 0xf7b   :  { %v2408_v32 = vsub.f32 %v2351_v51, %v2392_v54  ;;  %v2416_v30 = vadd.f32 %v2415_v53, %v2414_v52 }
 0xf7d   :  { %v2412_v57 = vmul.f32 %v2614_v25, %v2408_v32  ;;  %v2418_v61 = vadd.f32 %v2417_v56, %v2416_v30  ;;  %v2438_v5 = vpop.xlane.xlu1 %2437 }
 0xf7e   :  { %v2439_v24 = vrot.slane %v2438_v5, 4 }
 0xf7f   :  { %v2419_v1 = vsel %vm2413_vm1, %v2412_v57, 0.0 }
 0xf80   :  { %v2420_v3 = vadd.f32 %v2419_v1, %v2418_v61  ;;  %v2440_v34 = vadd.f32 %v2439_v24, %v2438_v5 }
 0xf82   :  { %2421 = vadd.xlane.f32.xlu0 %v2420_v3  ;;  %v2441_v27 = vrot.slane %v2440_v34, 2 }
 0xf84   :  { %v2442_v12 = vadd.f32 %v2441_v27, %v2440_v34 }
 0xf86   :  { %v2443_v37 = vrot.slane %v2442_v12, 1 }
 0xf88   :  { %v2444_v16 = vadd.f32 %v2443_v37, %v2442_v12 }
0x100f   :  { %v2422_v6 = vpop.xlane.xlu0 %2421 }
0x1010   :  { %v2423_v41 = vrot.slane %v2422_v6, 4 }
0x1012   :  { %v2424_v11 = vadd.f32 %v2423_v41, %v2422_v6 }
0x1014   :  { %v2425_v4 = vrot.slane %v2424_v11, 2 }
0x1016   :  { %v2426_v58 = vadd.f32 %v2425_v4, %v2424_v11 }
0x1018   :  { %v2427_v62 = vrot.slane %v2426_v58, 1 }
0x101a   :  { %v2428_v2 = vadd.f32 %v2427_v62, %v2426_v58 }
0x101c   :  { %2807 = vpush %v2428_v2 }
0x101d   :  { %2809 = vpush %v2444_v16 }
0x104d   :  { %s2808_s11 = spop %2807 }
0x104e   :  { %s2810_s24 = spop %2809 }
0x104f   :  { %s2446_s20 = smax.f32 %s3321_s6, %s2810_s24 }
0x1050   :  { %v2447_v55 = vstv %s2446_s20 }
0x1051   :  { %3126 = vrcp.f32 %v2447_v55 }
0x105b   :  { %v3127_v13 = vpop.eup %3126 }
0x105c   :  { %2811 = vpush %v3127_v13 }
0x108d   :  { %s2812_s5 = spop %2811 }
0x108e   :  { %s2450_s23 = smul.f32 %s2812_s5, %s2808_s11 }
0x1090   :  { %2452 = sst [smem:[#allocation14]] %s2450_s23 }
0x1091   :  { %3291 = shalt.err (!%p3288_p2)
}
0x1092   :  { %s3322_s27 = smov [#allocation14]  }
0x1093   :  { %2460 = dma.smem_to_hbm %s3322_s27, 16, %s3976_s12, [#allocation4]  }
0x1094   :  { %3300 = dma.done.wait [#allocation4], 16  }
0x1095   :  { %3301 = vsyncadd [#allocation4], 4294967280 }
0x1096   :  { %2464 = sfence }
0x1097   :  { %2465 = vsyncpa [#allocation3], 1 }
0x1098   :  { %2466 = vsyncpa [#allocation6], 1 }
0x1099   :  { %2467 = vsyncpa [#allocation9], 1 }
0x109a   :  { %2468 = vsyncpa [#allocation12], 1 }
0x109b   :  { %2469 = vsyncpa [#allocation4], 1 }

</bundles_post_ra>
